<compile_context>
chip_gen: v7x
topology: tpu7x:2x2x1
jax: 0.10.0
libtpu: 0.0.40
codegen_flags: <defaults>
</compile_context>

<pallas_src>
import jax
import jax.numpy as jnp
from jax.experimental import pallas as pl
from jax.experimental.pallas import tpu as pltpu


def _round_up(n, m):
    return ((n + m - 1) // m) * m


def _cdiv(a, b):
    return -(-a // b)


# ----------------------------------------------------------------------------
# Kernel: one batch tile per grid step; weights/biases are VMEM-resident
# (constant block indices) across all grid steps.
# ----------------------------------------------------------------------------
def mlp_kernel(x_ref, w1_ref, b1_ref, w2_ref, b2_ref, o_ref):
    # Cast the streamed x tile to the matmul dtype in-kernel (no wrapper copy).
    x = x_ref[...].astype(w1_ref.dtype)
    # fc1 on the MXU, f32 accumulation.
    h = jnp.dot(x, w1_ref[...], preferred_element_type=jnp.float32)
    # bias + ReLU in f32 on the VPU.
    h = jnp.maximum(h + b1_ref[...], 0.0)
    # fc2 on the MXU, f32 accumulation.
    out = jnp.dot(h.astype(w2_ref.dtype), w2_ref[...],
                  preferred_element_type=jnp.float32)
    o_ref[...] = (out + b2_ref[...]).astype(o_ref.dtype)


# ----------------------------------------------------------------------------
# One-time parameter preparation: pad to lane-aligned shapes and cast to the
# compute dtype. Call this ONCE (e.g. at model init), not per forward call.
# ----------------------------------------------------------------------------
def prepare_params(w1, b1, w2, b2, *, compute_dtype=jnp.bfloat16):
    """w1: (in, hidden), b1: (hidden,), w2: (hidden, classes), b2: (classes,)"""
    in_size, hidden = w1.shape
    classes = w2.shape[1]
    hidden_p = _round_up(hidden, 128)     # 500 -> 512
    classes_p = _round_up(classes, 128)   # 10  -> 128

    cdt = jnp.dtype(compute_dtype)
    w1_p = jnp.zeros((in_size, hidden_p), cdt).at[:, :hidden].set(w1.astype(cdt))
    b1_p = jnp.zeros((1, hidden_p), jnp.float32).at[0, :hidden].set(
        b1.astype(jnp.float32))
    w2_p = jnp.zeros((hidden_p, classes_p), cdt).at[:hidden, :classes].set(
        w2.astype(cdt))
    b2_p = jnp.zeros((1, classes_p), jnp.float32).at[0, :classes].set(
        b2.astype(jnp.float32))

    return {
        "w1": w1_p, "b1": b1_p, "w2": w2_p, "b2": b2_p,
        "in_size": in_size, "hidden_p": hidden_p,
        "classes": classes, "classes_p": classes_p,
    }


def _choose_tile(B, batch_tile):
    """Even batch split; >=2 grid steps when possible (v7x megacore)."""
    n = max(1, _cdiv(B, batch_tile))
    if n == 1 and B >= 16:
        n = 2                       # let the two v7x TensorCores both work
    tile = max(8, _round_up(_cdiv(B, n), 8))
    return tile, tile * n, n


# ----------------------------------------------------------------------------
# Forward pass. `params` comes from prepare_params (already padded/cast).
# ----------------------------------------------------------------------------
def neural_network_forward(x, params, *, batch_tile=1024):
    B, in_size = x.shape
    assert in_size == params["in_size"]
    hidden_p = params["hidden_p"]
    classes = params["classes"]
    classes_p = params["classes_p"]
    w1_p, b1_p, w2_p, b2_p = params["w1"], params["b1"], params["w2"], params["b2"]

    tile, B_p, n_tiles = _choose_tile(B, batch_tile)

    # Only touch x if the batch doesn't divide into whole tiles; pad rows only.
    if B_p != B:
        x_in = jnp.pad(x, ((0, B_p - B), (0, 0)))
    else:
        x_in = x

    cdt = w1_p.dtype
    cost = pl.CostEstimate(
        flops=2 * B_p * (in_size * hidden_p + hidden_p * classes_p),
        transcendentals=0,
        bytes_accessed=(x_in.size * x_in.dtype.itemsize
                        + (w1_p.size + w2_p.size) * cdt.itemsize
                        + (b1_p.size + b2_p.size + B_p * classes_p) * 4),
    )

    out_p = pl.pallas_call(
        mlp_kernel,
        out_shape=jax.ShapeDtypeStruct((B_p, classes_p), jnp.float32),
        grid_spec=pltpu.PrefetchScalarGridSpec(
            num_scalar_prefetch=0,
            grid=(n_tiles,),
            in_specs=[
                pl.BlockSpec((tile, in_size), lambda i: (i, 0)),
                # constant block indices -> weights/biases stay VMEM-resident
                pl.BlockSpec((in_size, hidden_p), lambda i: (0, 0)),
                pl.BlockSpec((1, hidden_p), lambda i: (0, 0)),
                pl.BlockSpec((hidden_p, classes_p), lambda i: (0, 0)),
                pl.BlockSpec((1, classes_p), lambda i: (0, 0)),
            ],
            out_specs=pl.BlockSpec((tile, classes_p), lambda i: (i, 0)),
        ),
        compiler_params=pltpu.CompilerParams(
            dimension_semantics=("parallel",)),
        cost_estimate=cost,
    )(x_in, w1_p, b1_p, w2_p, b2_p)

    return out_p[:B, :classes]


def init_params(key, in_size, hidden, classes):
    """Deterministic init mirroring nn.Linear's U(-1/sqrt(fan_in), 1/sqrt(fan_in))."""
    k1, k2, k3, k4 = jax.random.split(key, 4)
    bound1 = 1.0 / jnp.sqrt(in_size)
    bound2 = 1.0 / jnp.sqrt(hidden)
    # stored as (in_features, out_features) == W^T of PyTorch's (out, in)
    w1 = jax.random.uniform(k1, (in_size, hidden), jnp.float32, -bound1, bound1)
    b1 = jax.random.uniform(k2, (hidden,), jnp.float32, -bound1, bound1)
    w2 = jax.random.uniform(k3, (hidden, classes), jnp.float32, -bound2, bound2)
    b2 = jax.random.uniform(k4, (classes,), jnp.float32, -bound2, bound2)
    return w1, b1, w2, b2


if __name__ == "__main__":
    # TODO(synk): trainModel/testModel (DataLoader, SGD, CrossEntropyLoss) are
    # training-host logic, not part of the forward pass -> not translated.
    inputSize, hiddenSize, classes = 784, 500, 10
    batch = 100  # the module's batchSize; exercises pad + 2-tile (megacore) path

    key = jax.random.PRNGKey(0)
    kx, kp = jax.random.split(key)
    x = jax.random.normal(kx, (batch, inputSize), jnp.float32)
    w1, b1, w2, b2 = init_params(kp, inputSize, hiddenSize, classes)

    ref = jnp.maximum(x @ w1 + b1, 0.0) @ w2 + b2

    # Default fast path: bf16 matmul operands, f32 accumulation (all chips).
    params_bf16 = prepare_params(w1, b1, w2, b2, compute_dtype=jnp.bfloat16)
    out_bf16 = jax.block_until_ready(neural_network_forward(x, params_bf16))
    assert out_bf16.shape == (batch, classes)
    assert jnp.allclose(out_bf16, ref, atol=5e-2, rtol=5e-2)

    # f32 path (tight parity with the plain-JAX reference).
    params_f32 = prepare_params(w1, b1, w2, b2, compute_dtype=jnp.float32)
    out_f32 = jax.block_until_ready(neural_network_forward(x, params_f32))
    assert out_f32.shape == (batch, classes)
    assert jnp.allclose(out_f32, ref, atol=5e-4, rtol=5e-4)

    print("KERNEL_OK")
</pallas_src>

<mosaic_0001>
module attributes {stable_mosaic.version = 11 : i64} {
  func.func @mlp_kernel(%arg0: i32, %arg1: memref<56x784xf32, #tpu.memory_space<vmem>>, %arg2: memref<784x512xbf16, #tpu.memory_space<vmem>>, %arg3: memref<1x512xf32, #tpu.memory_space<vmem>>, %arg4: memref<512x128xbf16, #tpu.memory_space<vmem>>, %arg5: memref<1x128xf32, #tpu.memory_space<vmem>>, %arg6: memref<56x128xf32, #tpu.memory_space<vmem>>) attributes {dimension_semantics = [#tpu.dimension_semantics<parallel>], iteration_bounds = array<i64: 2>, scalar_prefetch = 0 : i64, scratch_operands = 0 : i64, tpu.core_type = #tpu.core_type<tc>, window_params = [{transform_indices = @transform_0, window_bounds = array<i64: 56, 784>}, {pipeline_mode = #tpu.pipeline_mode<synchronous>, transform_indices = @transform_1, window_bounds = array<i64: 784, 512>}, {pipeline_mode = #tpu.pipeline_mode<synchronous>, transform_indices = @transform_2, window_bounds = array<i64: 1, 512>}, {pipeline_mode = #tpu.pipeline_mode<synchronous>, transform_indices = @transform_3, window_bounds = array<i64: 512, 128>}, {pipeline_mode = #tpu.pipeline_mode<synchronous>, transform_indices = @transform_4, window_bounds = array<i64: 1, 128>}, {transform_indices = @transform_5, window_bounds = array<i64: 56, 128>}]} {
    %c0 = arith.constant 0 : index
    %c0_0 = arith.constant 0 : index
    %0 = vector.load %arg1[%c0, %c0_0] : memref<56x784xf32, #tpu.memory_space<vmem>>, vector<56x784xf32>
    %1 = arith.truncf %0 : vector<56x784xf32> to vector<56x784xbf16>
    %c0_1 = arith.constant 0 : index
    %c0_2 = arith.constant 0 : index
    %2 = vector.load %arg2[%c0_1, %c0_2] : memref<784x512xbf16, #tpu.memory_space<vmem>>, vector<784x512xbf16>
    %cst = arith.constant dense<0.000000e+00> : vector<56x512xf32>
    %3 = tpu.matmul %1, %2, %cst {dimension_numbers = #tpu.dot_dimension_numbers<[1], [0], [0], [1], [0, 0, 1, 1], [], []>} : vector<56x784xbf16>, vector<784x512xbf16>, vector<56x512xf32> -> vector<56x512xf32>
    %c0_3 = arith.constant 0 : index
    %c0_4 = arith.constant 0 : index
    %4 = vector.load %arg3[%c0_3, %c0_4] : memref<1x512xf32, #tpu.memory_space<vmem>>, vector<1x512xf32>
    %5 = vector.broadcast %4 : vector<1x512xf32> to vector<56x512xf32>
    %6 = arith.addf %3, %5 : vector<56x512xf32>
    %cst_5 = arith.constant 0.000000e+00 : f32
    %7 = vector.broadcast %cst_5 : f32 to vector<56x512xf32>
    %8 = arith.maximumf %6, %7 : vector<56x512xf32>
    %9 = arith.truncf %8 : vector<56x512xf32> to vector<56x512xbf16>
    %c0_6 = arith.constant 0 : index
    %c0_7 = arith.constant 0 : index
    %10 = vector.load %arg4[%c0_6, %c0_7] : memref<512x128xbf16, #tpu.memory_space<vmem>>, vector<512x128xbf16>
    %cst_8 = arith.constant dense<0.000000e+00> : vector<56x128xf32>
    %11 = tpu.matmul %9, %10, %cst_8 {dimension_numbers = #tpu.dot_dimension_numbers<[1], [0], [0], [1], [0, 0, 1, 1], [], []>} : vector<56x512xbf16>, vector<512x128xbf16>, vector<56x128xf32> -> vector<56x128xf32>
    %c0_9 = arith.constant 0 : index
    %c0_10 = arith.constant 0 : index
    %12 = vector.load %arg5[%c0_9, %c0_10] : memref<1x128xf32, #tpu.memory_space<vmem>>, vector<1x128xf32>
    %13 = vector.broadcast %12 : vector<1x128xf32> to vector<56x128xf32>
    %14 = arith.addf %11, %13 : vector<56x128xf32>
    %c0_11 = arith.constant 0 : index
    %c0_12 = arith.constant 0 : index
    %15 = vector.load %arg6[%c0_11, %c0_12] : memref<56x128xf32, #tpu.memory_space<vmem>>, vector<56x128xf32>
    tpu.vector_store %arg6[%c0_11, %c0_12], %14 {strides = array<i32>} : memref<56x128xf32, #tpu.memory_space<vmem>>, vector<56x128xf32>,
    return
  }
  func.func @transform_0(%arg0: i32) -> (i32, i32) {
    %c0_i32 = arith.constant 0 : i32
    %c0_i32_0 = arith.constant 0 : i32
    return %arg0, %c0_i32 : i32, i32
  }
  func.func @transform_1(%arg0: i32) -> (i32, i32) {
    %c0_i32 = arith.constant 0 : i32
    %c0_i32_0 = arith.constant 0 : i32
    %c0_i32_1 = arith.constant 0 : i32
    return %c0_i32, %c0_i32_0 : i32, i32
  }
  func.func @transform_2(%arg0: i32) -> (i32, i32) {
    %c0_i32 = arith.constant 0 : i32
    %c0_i32_0 = arith.constant 0 : i32
    %c0_i32_1 = arith.constant 0 : i32
    return %c0_i32, %c0_i32_0 : i32, i32
  }
  func.func @transform_3(%arg0: i32) -> (i32, i32) {
    %c0_i32 = arith.constant 0 : i32
    %c0_i32_0 = arith.constant 0 : i32
    %c0_i32_1 = arith.constant 0 : i32
    return %c0_i32, %c0_i32_0 : i32, i32
  }
  func.func @transform_4(%arg0: i32) -> (i32, i32) {
    %c0_i32 = arith.constant 0 : i32
    %c0_i32_0 = arith.constant 0 : i32
    %c0_i32_1 = arith.constant 0 : i32
    return %c0_i32, %c0_i32_0 : i32, i32
  }
  func.func @transform_5(%arg0: i32) -> (i32, i32) {
    %c0_i32 = arith.constant 0 : i32
    %c0_i32_0 = arith.constant 0 : i32
    return %arg0, %c0_i32 : i32, i32
  }
}

</mosaic_0001>

<bundles_post_ra>
// kernel: tpu_custom_call.1
= control target key start
LH: loop header
LB: loop body
LE: loop exit
PB: predicated region body
PF: predicated region fallthrough
CT: control target
= control target key end

     0   :  { %10 = vsyncpa [#allocation3], 0  ;;  %s4097_s0 = inlined_call_operand.hbm [shape: f32[112,784], index: 0, kind: input, shape index: {}]   ;;  %s4098_s1 = inlined_call_operand.hbm [shape: bf16[784,512], index: 1, kind: input, shape index: {}]   ;;  %s4099_s2 = inlined_call_operand.vmem [shape: f32[1,512], index: 2, kind: input, shape index: {}]   ;;  %s4100_s3 = inlined_call_operand.hbm [shape: bf16[512,128], index: 3, kind: input, shape index: {}]   ;;  %s4101_s4 = inlined_call_operand.vmem [shape: f32[1,128], index: 4, kind: input, shape index: {}]   ;;  %s4102_s5 = inlined_call_operand.hbm [shape: f32[112,128], index: 5, kind: output, shape index: {}]  }
   0x1   :  { %12 = vsyncpa [#allocation3 + $0x1], 0 }
   0x2   :  { %13 = vsyncpa [#allocation6], 0 }
   0x3   :  { %14 = vsyncpa [#allocation4], 0 }
   0x4   :  { %16 = vsyncpa [#allocation4 + $0x1], 0  ;;  %s3742_s18 = smov 0   ;;  %s3744_s19 = smov 0  }
   0x5   :  { %s3746_s20 = smov 0   ;;  %s3748_s21 = smov 0  }
   0x6 LB: > { %s3763_s22 = sadd.s32 4294967295, %s3697_s21   ;;  %s2680_s23 = sadd.s32 4294967294, %s3697_s21   ;;  %s3697_s21 = sphi %s3748_s21, %s4122_s21   ;;  %s3693_s20 = sphi %s3746_s20, %s4121_s20   ;;  %s3689_s19 = sphi %s3744_s19, %s4120_s19   ;;  %s3685_s18 = sphi %s3742_s18, %s4119_s18  }
   0x7   : > { %p42_p0 = scmp.ne.s32.totalorder %s3689_s19, %s3685_s18  ;;  %p4103_p1 = scmp.eq.s32.totalorder %s3763_s22, 0 }
   0x8   : > { %p156_p3 = scmp.eq.s32.totalorder %s2680_s23, 1  ;;  %p2681_p5 = scmp.ge.s32.totalorder %s3697_s21, 1 }
   0x9   : > { %p3772_p4 = por %p4103_p1, %p42_p0  ;;  %p163_p7 = scmp.lt.s32.totalorder %s3697_s21, 3 }
   0xa   : > { %p3777_p6 = por %p156_p3, %p42_p0  ;;  %s3699_s27 = smov [#allocation5]  }
   0xb   : > { %s4106_s24 = scalar_select %p3772_p4, 1, 0 }
   0xc   : > { %s4107_s25 = scalar_select %p3777_p6, 1, 0 }
   0xd   : > { %p3782_p8 = pnand %p2681_p5, %p163_p7  ;;  %s175_s28 = sshll.u32 %s3699_s27, 4  ;;  %s3786_s28 = int_to_ptr.vmem [resolvable:$true] %s175_s28 }
   0xe   : > { %s3700_s30 = smov [#allocation7]   ;;  %s3541_s9 = scalar_lea.hbm %s4098_s1, 25088 }
   0xf   : > { %p3150_p9 = pneg %p3782_p8  ;;  %s191_s6 = sshll.u32 %s3700_s30, 4  ;;  %s3797_s6 = int_to_ptr.vmem [resolvable:$true] %s191_s6 }
  0x10   : > { %p3542_p12 = scmp.ne.s32.totalorder %s4098_s1, %s3541_s9  ;;  %p3548_p5 = scmp.lt.u32.totalorder %s3541_s9, %s4098_s1 }
  0x11   : > { %p3793_p11 = pnand %p3150_p9, %p4103_p1 }
  0x13   : > { %p3543_p13 = pneg %p3793_p11 }
  0x15   : > { %p3544_p0 = pnand %p3543_p13, %p3542_p12 }
  0x17   : > { %p3545_p3 = pneg %p3544_p0 }
  0x19   : > { %p3550_p7 = pnand %p3548_p5, %p3545_p3 }
  0x1b   : > { %3553 = shalt.err (!%p3550_p7)
}
  0x1c   : > { %s3554_s14 = scalar_lea.vmem %s3786_s28, 25088  ;;  %p3562_p2 = scmp.lt.s32.totalorder %s3786_s28, %s3786_s28 }
  0x1d   : > { %p3555_p9 = scmp.ne.s32.totalorder %s3786_s28, %s3554_s14  ;;  %p3563_p12 = scmp.lt.s32.totalorder %s3554_s14, %s3554_s14 }
  0x1f   : > { %p3557_p10 = pnand %p3555_p9, %p3543_p13  ;;  %p3564_p0 = por %p3563_p12, %p3562_p2 }
  0x21   : > { %p3558_p1 = pneg %p3557_p10 }
  0x23   : > { %p3565_p6 = pnand %p3564_p0, %p3558_p1 }
  0x25   : > { %3568 = shalt.err (!%p3565_p6)
}
  0x26   : > { %s3701_s15 = smov 256   ;;  %s3702_s16 = smov 16  }
  0x27   : > { %3153 = dma.hbm_to_vmem [thread:$0]  (!%p3793_p11), %s4098_s1, 25088, %s3786_s28, [#allocation6], %s3701_s15, %s3701_s15, %s3702_s16  }
  0x28   : > { %s3569_s7 = scalar_lea.hbm %s4100_s3, 4096 }
  0x29   : > { %p3570_p2 = scmp.ne.s32.totalorder %s4100_s3, %s3569_s7  ;;  %p3576_p10 = scmp.lt.u32.totalorder %s3569_s7, %s4100_s3 }
  0x2b   : > { %p3572_p1 = pnand %p3570_p2, %p3543_p13 }
  0x2d   : > { %p3573_p6 = pneg %p3572_p1 }
  0x2f   : > { %p3578_p3 = pnand %p3576_p10, %p3573_p6 }
  0x31   : > { %3581 = shalt.err (!%p3578_p3)
}
  0x32   : > { %s3582_s28 = scalar_lea.vmem %s3797_s6, 4096  ;;  %p3590_p12 = scmp.lt.s32.totalorder %s3797_s6, %s3797_s6 }
  0x33   : > { %p3583_p5 = scmp.ne.s32.totalorder %s3797_s6, %s3582_s28  ;;  %p3591_p0 = scmp.lt.s32.totalorder %s3582_s28, %s3582_s28 }
  0x35   : > { %p3585_p7 = pnand %p3583_p5, %p3543_p13  ;;  %p3592_p2 = por %p3591_p0, %p3590_p12 }
  0x37   : > { %p3586_p9 = pneg %p3585_p7 }
  0x39   : > { %p3593_p1 = pnand %p3592_p2, %p3586_p9 }
  0x3b   : > { %3596 = shalt.err (!%p3593_p1)
}
  0x3c   : > { %s3703_s12 = smov 64   ;;  %s3704_s13 = smov 4  }
  0x3d   : > { %3156 = dma.hbm_to_vmem [thread:$0]  (!%p3793_p11), %s4100_s3, 4096, %s3797_s6, [#allocation6], %s3703_s12, %s3703_s12, %s3704_s13  }
  0x3e   : > { %s3852_s16 = sadd.s32 1, %s3697_s21   ;;  %s29_s23 = sadd.s32 1, %s3693_s20 }
  0x3f   : > { %s26_s17 = ssub.s32 %s3697_s21, %s3852_s16  ;;  %p36_p6 = scmp.ne.s32.totalorder %s3693_s20, %s3689_s19 }
  0x40   : > { %p27_p13 = scmp.eq.s32.totalorder %s26_s17, 0  ;;  %p37_p10 = scmp.eq.s32.totalorder %s3697_s21, 0 }
  0x41   : > { %p3167_p3 = scmp.lt.s32.totalorder %s3697_s21, 2  ;;  %p4110_p7 = scmp.eq.s32.totalorder %s3763_s22, 1 }
  0x42   : > { %s3862_s27 = scalar_select %p27_p13, %s3693_s20, %s29_s23  }
  0x43   : > { %p38_p5 = por %p37_p10, %p36_p6  ;;  %p3866_p9 = por %p4110_p7, %p36_p6 }
  0x44   : > { %s208_s29 = sand.u32 1, %s3693_s20   ;;  %s3168_s7 = smul.u32 6272, %s3697_s21 }
  0x45   : > { %s4111_s30 = scalar_select %p3866_p9, 1, 0 }
  0x46   : > { %s3134_s6 = smul.u32 392, %s208_s29  ;;  %s3875_s10 = scalar_lea.hbm %s4097_s0, %s3168_s7 }
  0x47   : > { %p3877_p11 = pnand %p3167_p3, %p38_p5  ;;  %s3883_s13 = scalar_lea.sflag [#allocation3], %s208_s29 }
  0x48   : > { %s212_s28 = scalar_lea.vmem [#allocation2], %s3134_s6  ;;  %s3597_s14 = scalar_lea.hbm %s3875_s10, 6272 }
  0x49   : > { %s220_s12 = sshll.u32 %s212_s28, 4  ;;  %p3598_p12 = scmp.ne.s32.totalorder %s3875_s10, %s3597_s14  ;;  %s3881_s12 = int_to_ptr.vmem [resolvable:$true] %s220_s12 }
  0x4a   : > { %p3599_p0 = pneg %p3877_p11  ;;  %s3602_s23 = scalar_lea.hbm %s4097_s0, 12544 }
  0x4b   : > { %p3603_p13 = scmp.lt.u32.totalorder %s3875_s10, %s4097_s0  ;;  %p3604_p6 = scmp.lt.u32.totalorder %s3602_s23, %s3597_s14 }
  0x4c   : > { %p3600_p2 = pnand %p3599_p0, %p3598_p12  ;;  %p3606_p3 = scmp.lt.u32.totalorder %s3597_s14, %s3875_s10 }
  0x4d   : > { %p3605_p10 = por %p3604_p6, %p3603_p13 }
  0x4e   : > { %p3601_p1 = pneg %p3600_p2 }
  0x4f   : > { %p3607_p5 = por %p3606_p3, %p3605_p10 }
  0x51   : > { %p3608_p7 = pnand %p3607_p5, %p3601_p1 }
  0x53   : > { %3611 = shalt.err (!%p3608_p7)
}
  0x54   : > { %s3612_s29 = scalar_lea.vmem %s3881_s12, 6272  ;;  %s3705_s6 = smov [#allocation2]  }
  0x55   : > { %p3613_p12 = scmp.ne.s32.totalorder %s3881_s12, %s3612_s29  ;;  %s3617_s9 = sshll.u32 %s3705_s6, 4  ;;  %s3618_s9 = int_to_ptr.vmem [resolvable:$false] %s3617_s9 }
  0x56   : > { %s3619_s28 = scalar_lea.vmem %s3618_s9, 12544  ;;  %p3620_p4 = scmp.lt.s32.totalorder %s3881_s12, %s3618_s9 }
  0x57   : > { %p3615_p2 = pnand %p3613_p12, %p3599_p0  ;;  %p3621_p13 = scmp.lt.s32.totalorder %s3619_s28, %s3612_s29 }
  0x59   : > { %p3616_p9 = pneg %p3615_p2  ;;  %p3622_p6 = por %p3621_p13, %p3620_p4 }
  0x5b   : > { %p3623_p10 = pnand %p3622_p6, %p3616_p9 }
  0x5d   : > { %3626 = shalt.err (!%p3623_p10)
}
  0x5e   : > { %s3706_s14 = smov 896   ;;  %s3707_s15 = smov 56  }
  0x5f   : > { %3160 = dma.hbm_to_vmem [thread:$0]  (!%p3877_p11), %s3875_s10, 6272, %s3881_s12, %s3883_s13, %s3706_s14, %s3706_s14, %s3707_s15  }
  0x60   : > { %232 = sbr.rel (%p3782_p8) target bundleno = 812 (0x32c), region = 40  ;;  %s3914_s17 = sand.u32 (!%p3782_p8), 1, %s3689_s19  }
  0x61   : > { %s3136_s23 = smul.u32 (!%p3782_p8), 392, %s3914_s17  ;;  %s235_s7 = scalar_lea.sflag (!%p3782_p8), [#allocation3], %s3914_s17 }
  0x62   : > { %p4113_p4 = scmp.ne.s32.totalorder (!%p3782_p8), %s4106_s24, 0 }
  0x63   : > { %s3918_s8 = scalar_lea.vmem (!%p3782_p8), [#allocation2], %s3136_s23 }
  0x67   : > { %3672 = dma.done.wait (%p4113_p4), %s235_s7, 6272  }
  0x68   : > { %3674 = vsyncadd (%p4113_p4), %s235_s7, 4294961024  ;;  %p4114_p9 = scmp.eq.s32.totalorder %s3763_s22, 0 }
  0x6a   : > { %3676 = dma.done.wait (%p4114_p9), [#allocation6], 29184   ;;  %p4115_p8 = pmov %p4114_p9 }
  0x6b   : > { %v3215_v0 = vld [vmem:[#allocation5 + $0x4] ss:$16 sps:$4 sm:$0xff]   ;;  %v3217_v1 = vld [vmem:[#allocation5 + $0xc] ss:$16 sps:$4 sm:$0xff]   ;;  %v3219_v2 = vld [vmem:[#allocation5] ss:$16 sps:$4 sm:$0xff]  }
  0x6c   : > { %3678 = vsyncadd (%p4115_p8), [#allocation6], 4294938112  ;;  %1564 = vmatprep.subr.bf16.mxu0 %v3215_v0  ;;  %v3220_v3 = vld [vmem:[#allocation5 + $0x8] ss:$16 sps:$4 sm:$0xff]   ;;  %1848 = vmatprep.subr.bf16.mxu1 %v3217_v1  ;;  %v3221_v4 = vld [vmem:[#allocation5 + $0x24] ss:$16 sps:$4 sm:$0xff]  }
  0x6d   : > { %1565 = vmatpush1.bf16.msra.mxu0 %v3219_v2  ;;  %1849 = vmatpush1.bf16.msra.mxu1 %v3220_v3  ;;  %v3223_v5 = vld [vmem:[#allocation5 + $0x2c] ss:$16 sps:$4 sm:$0xff]   ;;  %v3225_v6 = vld [vmem:[#allocation5 + $0x20] ss:$16 sps:$4 sm:$0xff]   ;;  %v3226_v7 = vld [vmem:[#allocation5 + $0x28] ss:$16 sps:$4 sm:$0xff]  }
  0x6e   : > { %1566 = vmatprep.subr.bf16.mxu0 %v3221_v4  ;;  %1850 = vmatprep.subr.bf16.mxu1 %v3223_v5  ;;  %v3227_v8 = vld [vmem:[#allocation5 + $0x44] ss:$16 sps:$4 sm:$0xff]   ;;  %v3229_v9 = vld [vmem:[#allocation5 + $0x4c] ss:$16 sps:$4 sm:$0xff]   ;;  %v3231_v10 = vld [vmem:[#allocation5 + $0x40] ss:$16 sps:$4 sm:$0xff]  }
  0x6f   : > { %v3232_v11 = vld [vmem:[#allocation5 + $0x48] ss:$16 sps:$4 sm:$0xff]   ;;  %v3233_v12 = vld [vmem:[#allocation5 + $0x64] ss:$16 sps:$4 sm:$0xff]   ;;  %v3235_v13 = vld [vmem:[#allocation5 + $0x6c] ss:$16 sps:$4 sm:$0xff]  }
  0x70   : > { %v3237_v14 = vld [vmem:[#allocation5 + $0x60] ss:$16 sps:$4 sm:$0xff]   ;;  %v3238_v15 = vld [vmem:[#allocation5 + $0x68] ss:$16 sps:$4 sm:$0xff]   ;;  %v3239_v16 = vld [vmem:[#allocation5 + $0x84] ss:$16 sps:$4 sm:$0xff]  }
  0x71   : > { %1567 = vmatpush1.bf16.msra.mxu0 %v3225_v6  ;;  %1851 = vmatpush1.bf16.msra.mxu1 %v3226_v7  ;;  %v3241_v17 = vld [vmem:[#allocation5 + $0x8c] ss:$16 sps:$4 sm:$0xff]   ;;  %v3243_v18 = vld [vmem:[#allocation5 + $0x80] ss:$16 sps:$4 sm:$0xff]   ;;  %v3244_v19 = vld [vmem:[#allocation5 + $0x88] ss:$16 sps:$4 sm:$0xff]  }
  0x72   : > { %1568 = vmatprep.subr.bf16.mxu0 %v3227_v8  ;;  %1852 = vmatprep.subr.bf16.mxu1 %v3229_v9  ;;  %v3245_v20 = vld [vmem:[#allocation5 + $0xa4] ss:$16 sps:$4 sm:$0xff]   ;;  %v3247_v21 = vld [vmem:[#allocation5 + $0xac] ss:$16 sps:$4 sm:$0xff]   ;;  %v3249_v22 = vld [vmem:[#allocation5 + $0xa0] ss:$16 sps:$4 sm:$0xff]  }
  0x73   : > { %v3250_v23 = vld [vmem:[#allocation5 + $0xa8] ss:$16 sps:$4 sm:$0xff]   ;;  %v3251_v24 = vld [vmem:[#allocation5 + $0xc4] ss:$16 sps:$4 sm:$0xff]   ;;  %v3253_v25 = vld [vmem:[#allocation5 + $0xcc] ss:$16 sps:$4 sm:$0xff]  }
  0x74   : > { %v3255_v26 = vld [vmem:[#allocation5 + $0xc0] ss:$16 sps:$4 sm:$0xff]   ;;  %v3256_v27 = vld [vmem:[#allocation5 + $0xc8] ss:$16 sps:$4 sm:$0xff]   ;;  %v3257_v28 = vld [vmem:[#allocation5 + $0xe4] ss:$16 sps:$4 sm:$0xff]  }
  0x75   : > { %1569 = vmatpush1.bf16.msra.mxu0 %v3231_v10  ;;  %1853 = vmatpush1.bf16.msra.mxu1 %v3232_v11  ;;  %v3259_v29 = vld [vmem:[#allocation5 + $0xec] ss:$16 sps:$4 sm:$0xff]   ;;  %v3261_v30 = vld [vmem:[#allocation5 + $0xe0] ss:$16 sps:$4 sm:$0xff]   ;;  %v3262_v31 = vld [vmem:[#allocation5 + $0xe8] ss:$16 sps:$4 sm:$0xff]  }
  0x76   : > { %1570 = vmatprep.subr.bf16.mxu0 %v3233_v12  ;;  %1854 = vmatprep.subr.bf16.mxu1 %v3235_v13  ;;  %v3263_v32 = vld [vmem:[#allocation5 + $0x104] ss:$16 sps:$4 sm:$0xff]   ;;  %v3265_v33 = vld [vmem:[#allocation5 + $0x10c] ss:$16 sps:$4 sm:$0xff]   ;;  %v3267_v34 = vld [vmem:[#allocation5 + $0x100] ss:$16 sps:$4 sm:$0xff]  }
  0x77   : > { %v3268_v35 = vld [vmem:[#allocation5 + $0x108] ss:$16 sps:$4 sm:$0xff]   ;;  %v3269_v36 = vld [vmem:[#allocation5 + $0x124] ss:$16 sps:$4 sm:$0xff]   ;;  %v3271_v37 = vld [vmem:[#allocation5 + $0x12c] ss:$16 sps:$4 sm:$0xff]  }
  0x78   : > { %v3273_v38 = vld [vmem:[#allocation5 + $0x120] ss:$16 sps:$4 sm:$0xff]   ;;  %v3274_v39 = vld [vmem:[#allocation5 + $0x128] ss:$16 sps:$4 sm:$0xff]   ;;  %v3275_v40 = vld [vmem:[#allocation5 + $0x144] ss:$16 sps:$4 sm:$0xff]  }
  0x79   : > { %1571 = vmatpush1.bf16.msra.mxu0 %v3237_v14  ;;  %1855 = vmatpush1.bf16.msra.mxu1 %v3238_v15  ;;  %v3277_v41 = vld [vmem:[#allocation5 + $0x14c] ss:$16 sps:$4 sm:$0xff]   ;;  %v3279_v42 = vld [vmem:[#allocation5 + $0x140] ss:$16 sps:$4 sm:$0xff]   ;;  %v3280_v43 = vld [vmem:[#allocation5 + $0x148] ss:$16 sps:$4 sm:$0xff]  }
  0x7a   : > { %1572 = vmatprep.subr.bf16.mxu0 %v3239_v16  ;;  %1856 = vmatprep.subr.bf16.mxu1 %v3241_v17  ;;  %v3281_v44 = vld [vmem:[#allocation5 + $0x164] ss:$16 sps:$4 sm:$0xff]   ;;  %v3283_v45 = vld [vmem:[#allocation5 + $0x16c] ss:$16 sps:$4 sm:$0xff]   ;;  %v3285_v48 = vld [vmem:[#allocation5 + $0x160] ss:$16 sps:$4 sm:$0xff]  }
  0x7b   : > { %v277_v46 = vld [vmem:[%s3918_s8 + $0x8] sm:$0xff]  ;;  %v284_v47 = vld [vmem:[%s3918_s8 + $0x40] sm:$0xff]  ;;  %v283_v5 = vld [vmem:[%s3918_s8 + $0x38] sm:$0xff]  ;;  %vm1551_vm0 = vcmask 130048   ;;  %s3137_s12 = smul.u32 56, %s3914_s17  ;;  %p4116_p0 = scmp.ne.s32.totalorder %s4111_s30, 0 }
  0x7c   : > { %v3286_v49 = vld [vmem:[#allocation5 + $0x168] ss:$16 sps:$4 sm:$0xff]   ;;  %v326_v50 = vpack.c.bf16 %v284_v47, %v277_v46  ;;  %v3287_v51 = vld [vmem:[#allocation5 + $0x184] ss:$16 sps:$4 sm:$0xff]   ;;  %v3289_v52 = vld [vmem:[#allocation5 + $0x18c] ss:$16 sps:$4 sm:$0xff]  }
  0x7d   : > { %1573 = vmatpush1.bf16.msra.mxu0 %v3243_v18  ;;  %1857 = vmatpush1.bf16.msra.mxu1 %v3244_v19  ;;  %v3291_v53 = vld [vmem:[#allocation5 + $0x180] ss:$16 sps:$4 sm:$0xff]   ;;  %v3292_v54 = vld [vmem:[#allocation5 + $0x188] ss:$16 sps:$4 sm:$0xff]   ;;  %v3293_v55 = vld [vmem:[#allocation5 + $0x1a4] ss:$16 sps:$4 sm:$0xff]  }
  0x7e   : > { %1574 = vmatprep.subr.bf16.mxu0 %v3245_v20  ;;  %1858 = vmatprep.subr.bf16.mxu1 %v3247_v21  ;;  %v3295_v56 = vld [vmem:[#allocation5 + $0x1ac] ss:$16 sps:$4 sm:$0xff]   ;;  %v3297_v57 = vld [vmem:[#allocation5 + $0x1a0] ss:$16 sps:$4 sm:$0xff]   ;;  %v3298_v58 = vld [vmem:[#allocation5 + $0x1a8] ss:$16 sps:$4 sm:$0xff]  }
  0x7f   : > { %1596 = vmatprep.mubr.bf16.mxu0 %v326_v50  ;;  %1880 = vmatprep.mubr.bf16.mxu1 %v326_v50  ;;  %v3299_v59 = vld [vmem:[#allocation5 + $0x1c4] ss:$16 sps:$4 sm:$0xff]   ;;  %v3301_v60 = vld [vmem:[#allocation5 + $0x1cc] ss:$16 sps:$4 sm:$0xff]   ;;  %v3303_v61 = vld [vmem:[#allocation5 + $0x1c0] ss:$16 sps:$4 sm:$0xff]  }
  0x80   : > { %v3304_v62 = vld [vmem:[#allocation5 + $0x1c8] ss:$16 sps:$4 sm:$0xff]   ;;  %v3305_v63 = vld [vmem:[#allocation5 + $0x1e4] ss:$16 sps:$4 sm:$0xff]   ;;  %v3307_v0 = vld [vmem:[#allocation5 + $0x1ec] ss:$16 sps:$4 sm:$0xff]  }
  0x81   : > { %1575 = vmatpush1.bf16.msra.mxu0 %v3249_v22  ;;  %1859 = vmatpush1.bf16.msra.mxu1 %v3250_v23  ;;  %v3309_v1 = vld [vmem:[#allocation5 + $0x1e0] ss:$16 sps:$4 sm:$0xff]   ;;  %v3310_v2 = vld [vmem:[#allocation5 + $0x1e8] ss:$16 sps:$4 sm:$0xff]   ;;  %v3313_v3 = vld [vmem:[#allocation5 + $0x204] ss:$16 sps:$4 sm:$0xff]  }
  0x82   : > { %1576 = vmatprep.subr.bf16.mxu0 %v3251_v24  ;;  %1860 = vmatprep.subr.bf16.mxu1 %v3253_v25  ;;  %v276_v4 = vld [vmem:[%s3918_s8] sm:$0xff]  ;;  %v291_v16 = vld [vmem:[%s3918_s8 + $0x78] sm:$0xff]  ;;  %v298_v17 = vld [vmem:[%s3918_s8 + $0xb0] sm:$0xff]  ;;  %s4032_s13 = scalar_lea.vmem [#allocation8], %s3137_s12  ;;  %s2929_s6 = smul.u32 896, %s3763_s22 }
  0x83   : > { %v3316_v6 = vld [vmem:[#allocation5 + $0x20c] ss:$16 sps:$4 sm:$0xff]   ;;  %v3311_v7 = vld [vmem:[#allocation5 + $0x200] ss:$16 sps:$4 sm:$0xff]   ;;  %v3314_v8 = vld [vmem:[#allocation5 + $0x208] ss:$16 sps:$4 sm:$0xff]   ;;  %v325_v9 = vpack.c.bf16 %v283_v5, %v276_v4  ;;  %v333_v20 = vpack.c.bf16 %v298_v17, %v291_v16 }
  0x84   : > { %v3319_v10 = vld [vmem:[#allocation5 + $0x224] ss:$16 sps:$4 sm:$0xff]   ;;  %v3322_v11 = vld [vmem:[#allocation5 + $0x22c] ss:$16 sps:$4 sm:$0xff]   ;;  %v3317_v12 = vld [vmem:[#allocation5 + $0x220] ss:$16 sps:$4 sm:$0xff]   ;;  %s4052_s14 = scalar_lea.hbm %s4102_s5, %s2929_s6 }
  0x85   : > { %1577 = vmatpush1.bf16.msra.mxu0 %v3255_v26  ;;  %1861 = vmatpush1.bf16.msra.mxu1 %v3256_v27  ;;  %v3320_v13 = vld [vmem:[#allocation5 + $0x228] ss:$16 sps:$4 sm:$0xff]   ;;  %v3325_v14 = vld [vmem:[#allocation5 + $0x244] ss:$16 sps:$4 sm:$0xff]   ;;  %v3328_v15 = vld [vmem:[#allocation5 + $0x24c] ss:$16 sps:$4 sm:$0xff]  }
  0x86   : > { %1578 = vmatprep.subr.bf16.mxu0 %v3257_v28  ;;  %1862 = vmatprep.subr.bf16.mxu1 %v3259_v29  ;;  %v3323_v18 = vld [vmem:[#allocation5 + $0x240] ss:$16 sps:$4 sm:$0xff]   ;;  %v3326_v19 = vld [vmem:[#allocation5 + $0x248] ss:$16 sps:$4 sm:$0xff]   ;;  %v3331_v21 = vld [vmem:[#allocation5 + $0x264] ss:$16 sps:$4 sm:$0xff]  }
  0x87   : > { %v3334_v22 = vld [vmem:[#allocation5 + $0x26c] ss:$16 sps:$4 sm:$0xff]   ;;  %v3329_v25 = vld [vmem:[#allocation5 + $0x260] ss:$16 sps:$4 sm:$0xff]   ;;  %v3332_v26 = vld [vmem:[#allocation5 + $0x268] ss:$16 sps:$4 sm:$0xff]  }
  0x88   : > { %v290_v23 = vld [vmem:[%s3918_s8 + $0x70] sm:$0xff]  ;;  %v297_v24 = vld [vmem:[%s3918_s8 + $0xa8] sm:$0xff]  ;;  %s2588_s29 = sshll.u32 %s4032_s13, 4  ;;  %s2575_s22 = scalar_lea.sflag [#allocation4], %s3914_s17  ;;  %s4046_s29 = int_to_ptr.vmem [resolvable:$true] %s2588_s29 }
  0x89   : > { %1579 = vmatpush1.bf16.msra.mxu0 %v3261_v30  ;;  %1863 = vmatpush1.bf16.msra.mxu1 %v3262_v31  ;;  %v332_v27 = vpack.c.bf16 %v297_v24, %v290_v23  ;;  %v3337_v28 = vld [vmem:[#allocation5 + $0x284] ss:$16 sps:$4 sm:$0xff]   ;;  %v3340_v29 = vld [vmem:[#allocation5 + $0x28c] ss:$16 sps:$4 sm:$0xff]   ;;  %v3347_v47 = vld [vmem:[#allocation5 + $0x2c0] ss:$16 sps:$4 sm:$0xff]  }
  0x8a   : > { %1580 = vmatprep.subr.bf16.mxu0 %v3263_v32  ;;  %1864 = vmatprep.subr.bf16.mxu1 %v3265_v33  ;;  %v305_v30 = vld [vmem:[%s3918_s8 + $0xe8] sm:$0xff]  ;;  %v312_v31 = vld [vmem:[%s3918_s8 + $0x120] sm:$0xff]  ;;  %v318_v46 = vld [vmem:[%s3918_s8 + $0x150] sm:$0xff]  ;;  %s3627_s15 = scalar_lea.vmem %s4046_s29, 896  ;;  %s3709_s23 = smov [#allocation8]  }
  0x8b   : > { %v3335_v32 = vld [vmem:[#allocation5 + $0x280] ss:$16 sps:$4 sm:$0xff]   ;;  %v340_v33 = vpack.c.bf16 %v312_v31, %v305_v30  ;;  %v3358_v50 = vld [vmem:[#allocation5 + $0x2ec] ss:$16 sps:$4 sm:$0xff]   ;;  %v3374_v4 = vld [vmem:[#allocation5 + $0x348] ss:$16 sps:$4 sm:$0xff]   ;;  %p3628_p11 = scmp.ne.s32.totalorder %s4046_s29, %s3627_s15 }
  0x8c   : > { %v3379_v5 = vld [vmem:[#allocation5 + $0x364] ss:$16 sps:$4 sm:$0xff]   ;;  %v3392_v16 = vld [vmem:[#allocation5 + $0x3a8] ss:$16 sps:$4 sm:$0xff]   ;;  %v3401_v23 = vld [vmem:[#allocation5 + $0x3e0] ss:$16 sps:$4 sm:$0xff]  }
  0x8d   : > { %1581 = vmatpush1.bf16.msra.mxu0 %v3267_v34  ;;  %1865 = vmatpush1.bf16.msra.mxu1 %v3268_v35  ;;  %v3338_v34 = vld [vmem:[#allocation5 + $0x288] ss:$16 sps:$4 sm:$0xff]   ;;  %v3343_v35 = vld [vmem:[#allocation5 + $0x2a4] ss:$16 sps:$4 sm:$0xff]   ;;  %p3629_p1 = pnand %p3628_p11, %p4116_p0  ;;  %s3631_s7 = sshll.u32 %s3709_s23, 4  ;;  %s3632_s7 = int_to_ptr.vmem [resolvable:$false] %s3631_s7 }
  0x8e   : > { %1582 = vmatprep.subr.bf16.mxu0 %v3269_v36  ;;  %1866 = vmatprep.subr.bf16.mxu1 %v3271_v37  ;;  %v3346_v36 = vld [vmem:[#allocation5 + $0x2ac] ss:$16 sps:$4 sm:$0xff]   ;;  %v3397_v17 = vld [vmem:[#allocation5 + $0x3c4] ss:$16 sps:$4 sm:$0xff]   ;;  %v3404_v24 = vld [vmem:[#allocation5 + $0x3e8] ss:$16 sps:$4 sm:$0xff]   ;;  %p3634_p5 = scmp.lt.s32.totalorder %s4046_s29, %s3632_s7 }
  0x8f   : > { %v304_v37 = vld [vmem:[%s3918_s8 + $0xe0] sm:$0xff]  ;;  %p3630_p3 = pneg %p3629_p1 }
  0x90   : > { %v300_v31 = vld [vmem:[%s3918_s8 + $0xc0] sm:$0xff] }
  0x91   : > { %1583 = vmatpush1.bf16.msra.mxu0 %v3273_v38  ;;  %1867 = vmatpush1.bf16.msra.mxu1 %v3274_v39  ;;  %v311_v38 = vld [vmem:[%s3918_s8 + $0x118] sm:$0xff] }
  0x92   : > { %1584 = vmatprep.subr.bf16.mxu0 %v3275_v40  ;;  %1868 = vmatprep.subr.bf16.mxu1 %v3277_v41  ;;  %v339_v39 = vpack.c.bf16 %v311_v38, %v304_v37  ;;  %v3341_v40 = vld [vmem:[#allocation5 + $0x2a0] ss:$16 sps:$4 sm:$0xff]   ;;  %v3344_v41 = vld [vmem:[#allocation5 + $0x2a8] ss:$16 sps:$4 sm:$0xff]  }
  0x93   : > { %v3416_v38 = vld [vmem:[#allocation5 + $0x428] ss:$16 sps:$4 sm:$0xff]  }
  0x95   : > { %1585 = vmatpush1.bf16.msra.mxu0 %v3279_v42  ;;  %1869 = vmatpush1.bf16.msra.mxu1 %v3280_v43  ;;  %v319_v42 = vld [vmem:[%s3918_s8 + $0x158] sm:$0xff] }
  0x96   : > { %1586 = vmatprep.subr.bf16.mxu0 %v3281_v44  ;;  %1870 = vmatprep.subr.bf16.mxu1 %v3283_v45  ;;  %v3349_v43 = vld [vmem:[#allocation5 + $0x2c4] ss:$16 sps:$4 sm:$0xff]   ;;  %v3352_v44 = vld [vmem:[#allocation5 + $0x2cc] ss:$16 sps:$4 sm:$0xff]   ;;  %v347_v45 = vpack.c.bf16 %v319_v42, %v319_v42 }
  0x97   : > { %v3424_v42 = vld [vmem:[#allocation5 + $0x44c] ss:$16 sps:$4 sm:$0xff]  }
  0x99   : > { %1587 = vmatpush1.bf16.msra.mxu0 %v3285_v48  ;;  %1871 = vmatpush1.bf16.msra.mxu1 %v3286_v49  ;;  %v3350_v48 = vld [vmem:[#allocation5 + $0x2c8] ss:$16 sps:$4 sm:$0xff]   ;;  %v3355_v49 = vld [vmem:[#allocation5 + $0x2e4] ss:$16 sps:$4 sm:$0xff]  }
  0x9a   : > { %1588 = vmatprep.subr.bf16.mxu0 %v3287_v51  ;;  %1872 = vmatprep.subr.bf16.mxu1 %v3289_v52  ;;  %v346_v51 = vpack.c.bf16 %v318_v46, %v318_v46  ;;  %v279_v52 = vld [vmem:[%s3918_s8 + $0x18] sm:$0xff]  ;;  %v314_v46 = vld [vmem:[%s3918_s8 + $0x130] sm:$0xff] }
  0x9d   : > { %1589 = vmatpush1.bf16.msra.mxu0 %v3291_v53  ;;  %1873 = vmatpush1.bf16.msra.mxu1 %v3292_v54  ;;  %v286_v53 = vld [vmem:[%s3918_s8 + $0x50] sm:$0xff] }
  0x9e   : > { %1590 = vmatprep.subr.bf16.mxu0 %v3293_v55  ;;  %1874 = vmatprep.subr.bf16.mxu1 %v3295_v56  ;;  %v3353_v54 = vld [vmem:[#allocation5 + $0x2e0] ss:$16 sps:$4 sm:$0xff]   ;;  %v328_v55 = vpack.c.bf16 %v286_v53, %v279_v52  ;;  %v3356_v56 = vld [vmem:[#allocation5 + $0x2e8] ss:$16 sps:$4 sm:$0xff]  }
  0x9f   : > { %v3428_v52 = vld [vmem:[#allocation5 + $0x468] ss:$16 sps:$4 sm:$0xff]  }
  0xa0   : > { %v306_v53 = vld [vmem:[%s3918_s8 + $0xf0] sm:$0xff] }
  0xa1   : > { %1591 = vmatpush1.bf16.msra.mxu0 %v3297_v57  ;;  %1875 = vmatpush1.bf16.msra.mxu1 %v3298_v58  ;;  %v3361_v57 = vld [vmem:[#allocation5 + $0x304] ss:$16 sps:$4 sm:$0xff]   ;;  %v3364_v58 = vld [vmem:[#allocation5 + $0x30c] ss:$16 sps:$4 sm:$0xff]  }
  0xa2   : > { %1592 = vmatprep.subr.bf16.mxu0 %v3299_v59  ;;  %1876 = vmatprep.subr.bf16.mxu1 %v3301_v60  ;;  %v3359_v59 = vld [vmem:[#allocation5 + $0x300] ss:$16 sps:$4 sm:$0xff]   ;;  %v3362_v60 = vld [vmem:[#allocation5 + $0x308] ss:$16 sps:$4 sm:$0xff]  }
  0xa5   : > { %1593 = vmatpush1.bf16.msra.mxu0 %v3303_v61  ;;  %1877 = vmatpush1.bf16.msra.mxu1 %v3304_v62  ;;  %v3367_v61 = vld [vmem:[#allocation5 + $0x324] ss:$16 sps:$4 sm:$0xff]   ;;  %v3370_v62 = vld [vmem:[#allocation5 + $0x32c] ss:$16 sps:$4 sm:$0xff]  }
  0xa6   : > { %1594 = vmatprep.subr.bf16.mxu0 %v3305_v63  ;;  %1878 = vmatprep.subr.bf16.mxu1 %v3307_v0  ;;  %v3365_v63 = vld [vmem:[#allocation5 + $0x320] ss:$16 sps:$4 sm:$0xff]   ;;  %v3368_v0 = vld [vmem:[#allocation5 + $0x328] ss:$16 sps:$4 sm:$0xff]  }
  0xa9   : > { %1595 = vmatpush1.bf16.msra.mxu0 %v3309_v1  ;;  %1879 = vmatpush1.bf16.msra.mxu1 %v3310_v2  ;;  %v3373_v1 = vld [vmem:[#allocation5 + $0x344] ss:$16 sps:$4 sm:$0xff]   ;;  %v3376_v2 = vld [vmem:[#allocation5 + $0x34c] ss:$16 sps:$4 sm:$0xff]  }
  0xaa   : > { %1635 = vmatprep.subr.bf16.mxu0 %v3313_v3  ;;  %1919 = vmatprep.subr.bf16.mxu1 %v3316_v6  ;;  %v3371_v3 = vld [vmem:[#allocation5 + $0x340] ss:$16 sps:$4 sm:$0xff]   ;;  %v3382_v6 = vld [vmem:[#allocation5 + $0x36c] ss:$16 sps:$4 sm:$0xff]  }
  0xac   : > { %1597 = vmatmul.mubr.bf16.vlgmr.msra.gmra.mrb[0].mxu0 %v325_v9  ;;  %1881 = vmatmul.mubr.bf16.vlgmr.msra.gmra.mrb[0].mxu1 %v325_v9  ;;  %v3385_v9 = vld [vmem:[#allocation5 + $0x384] ss:$16 sps:$4 sm:$0xff]  }
  0xad   : > { %1636 = vmatpush1.bf16.msra.mxu0 %v3311_v7  ;;  %1920 = vmatpush1.bf16.msra.mxu1 %v3314_v8  ;;  %v3377_v7 = vld [vmem:[#allocation5 + $0x360] ss:$16 sps:$4 sm:$0xff]   ;;  %v3380_v8 = vld [vmem:[#allocation5 + $0x368] ss:$16 sps:$4 sm:$0xff]  }
  0xae   : > { %1637 = vmatprep.subr.bf16.mxu0 %v3319_v10  ;;  %1921 = vmatprep.subr.bf16.mxu1 %v3322_v11  ;;  %v3388_v10 = vld [vmem:[#allocation5 + $0x38c] ss:$16 sps:$4 sm:$0xff]   ;;  %v3383_v11 = vld [vmem:[#allocation5 + $0x380] ss:$16 sps:$4 sm:$0xff]  }
  0xaf   : > { %1606 = vmatprep.mubr.bf16.mxu0 %v333_v20  ;;  %1890 = vmatprep.mubr.bf16.mxu1 %v333_v20  ;;  %v3398_v20 = vld [vmem:[#allocation5 + $0x3c8] ss:$16 sps:$4 sm:$0xff]  }
  0xb1   : > { %1638 = vmatpush1.bf16.msra.mxu0 %v3317_v12  ;;  %1922 = vmatpush1.bf16.msra.mxu1 %v3320_v13  ;;  %v3386_v12 = vld [vmem:[#allocation5 + $0x388] ss:$16 sps:$4 sm:$0xff]   ;;  %v3391_v13 = vld [vmem:[#allocation5 + $0x3a4] ss:$16 sps:$4 sm:$0xff]  }
  0xb2   : > { %1639 = vmatprep.subr.bf16.mxu0 %v3325_v14  ;;  %1923 = vmatprep.subr.bf16.mxu1 %v3328_v15  ;;  %v3394_v14 = vld [vmem:[#allocation5 + $0x3ac] ss:$16 sps:$4 sm:$0xff]   ;;  %v3389_v15 = vld [vmem:[#allocation5 + $0x3a0] ss:$16 sps:$4 sm:$0xff]  }
  0xb4   : > { %1607 = vmatmul.mubr.bf16.gmra.mrb[4].mxu0 %v332_v27  ;;  %1891 = vmatmul.mubr.bf16.gmra.mrb[4].mxu1 %v332_v27  ;;  %v3409_v27 = vld [vmem:[#allocation5 + $0x404] ss:$16 sps:$4 sm:$0xff]  }
  0xb5   : > { %1640 = vmatpush1.bf16.msra.mxu0 %v3323_v18  ;;  %1924 = vmatpush1.bf16.msra.mxu1 %v3326_v19  ;;  %v3400_v18 = vld [vmem:[#allocation5 + $0x3cc] ss:$16 sps:$4 sm:$0xff]   ;;  %v3395_v19 = vld [vmem:[#allocation5 + $0x3c0] ss:$16 sps:$4 sm:$0xff]  }
  0xb6   : > { %1641 = vmatprep.subr.bf16.mxu0 %v3331_v21  ;;  %1925 = vmatprep.subr.bf16.mxu1 %v3334_v22  ;;  %v3403_v21 = vld [vmem:[#allocation5 + $0x3e4] ss:$16 sps:$4 sm:$0xff]   ;;  %v3406_v22 = vld [vmem:[#allocation5 + $0x3ec] ss:$16 sps:$4 sm:$0xff]  }
  0xb7   : > { %1616 = vmatprep.mubr.bf16.mxu0 %v340_v33  ;;  %1900 = vmatprep.mubr.bf16.mxu1 %v340_v33  ;;  %v3410_v33 = vld [vmem:[#allocation5 + $0x408] ss:$16 sps:$4 sm:$0xff]  }
  0xb9   : > { %1642 = vmatpush1.bf16.msra.mxu0 %v3329_v25  ;;  %1926 = vmatpush1.bf16.msra.mxu1 %v3332_v26  ;;  %v278_v25 = vld [vmem:[%s3918_s8 + $0x10] sm:$0xff]  ;;  %v285_v26 = vld [vmem:[%s3918_s8 + $0x48] sm:$0xff] }
  0xba   : > { %1643 = vmatprep.subr.bf16.mxu0 %v3337_v28  ;;  %1927 = vmatprep.subr.bf16.mxu1 %v3340_v29  ;;  %v3412_v28 = vld [vmem:[#allocation5 + $0x40c] ss:$16 sps:$4 sm:$0xff]   ;;  %v327_v30 = vpack.c.bf16 %v285_v26, %v278_v25  ;;  %v3467_v25 = vld [vmem:[#allocation5 + $0x540] ss:$16 sps:$4 sm:$0xff]   ;;  %v3470_v26 = vld [vmem:[#allocation5 + $0x548] ss:$16 sps:$4 sm:$0xff]  }
  0xbb   : > { %v293_v29 = vld [vmem:[%s3918_s8 + $0x88] sm:$0xff] }
  0xbc   : > { %1617 = vmatmul.mubr.bf16.gmra.mrb[8].mxu0 %v339_v39  ;;  %1901 = vmatmul.mubr.bf16.gmra.mrb[8].mxu1 %v339_v39  ;;  %v335_v37 = vpack.c.bf16 %v300_v31, %v293_v29  ;;  %v3421_v39 = vld [vmem:[#allocation5 + $0x444] ss:$16 sps:$4 sm:$0xff]   ;;  %v3473_v29 = vld [vmem:[#allocation5 + $0x560] ss:$16 sps:$4 sm:$0xff]  }
  0xbd   : > { %1644 = vmatpush1.bf16.msra.mxu0 %v3335_v32  ;;  %1928 = vmatpush1.bf16.msra.mxu1 %v3338_v34  ;;  %v3407_v32 = vld [vmem:[#allocation5 + $0x400] ss:$16 sps:$4 sm:$0xff]   ;;  %v3415_v34 = vld [vmem:[#allocation5 + $0x424] ss:$16 sps:$4 sm:$0xff]  }
  0xbe   : > { %1645 = vmatprep.subr.bf16.mxu0 %v3343_v35  ;;  %1929 = vmatprep.subr.bf16.mxu1 %v3346_v36  ;;  %v3418_v35 = vld [vmem:[#allocation5 + $0x42c] ss:$16 sps:$4 sm:$0xff]   ;;  %v3413_v36 = vld [vmem:[#allocation5 + $0x420] ss:$16 sps:$4 sm:$0xff]   ;;  %v3481_v31 = vld [vmem:[#allocation5 + $0x584] ss:$16 sps:$4 sm:$0xff]  }
  0xbf   : > { %1626 = vmatprep.mubr.bf16.mxu0 %v347_v45  ;;  %1910 = vmatprep.mubr.bf16.mxu1 %v347_v45  ;;  %v307_v45 = vld [vmem:[%s3918_s8 + $0xf8] sm:$0xff] }
  0xc1   : > { %1646 = vmatpush1.bf16.msra.mxu0 %v3341_v40  ;;  %1930 = vmatpush1.bf16.msra.mxu1 %v3344_v41  ;;  %v292_v40 = vld [vmem:[%s3918_s8 + $0x80] sm:$0xff]  ;;  %v299_v41 = vld [vmem:[%s3918_s8 + $0xb8] sm:$0xff] }
  0xc2   : > { %1647 = vmatprep.subr.bf16.mxu0 %v3349_v43  ;;  %1931 = vmatprep.subr.bf16.mxu1 %v3352_v44  ;;  %v3419_v43 = vld [vmem:[#allocation5 + $0x440] ss:$16 sps:$4 sm:$0xff]   ;;  %v334_v44 = vpack.c.bf16 %v299_v41, %v292_v40  ;;  %v3496_v40 = vld [vmem:[#allocation5 + $0x5cc] ss:$16 sps:$4 sm:$0xff]  }
  0xc3   : > { %v3491_v41 = vld [vmem:[#allocation5 + $0x5c0] ss:$16 sps:$4 sm:$0xff]  }
  0xc4   : > { %1627 = vmatmul.mubr.bf16.gmra.mrb[12].mxu0 %v346_v51  ;;  %1911 = vmatmul.mubr.bf16.gmra.mrb[12].mxu1 %v346_v51  ;;  %v342_v51 = vpack.c.bf16 %v314_v46, %v307_v45  ;;  %v3497_v45 = vld [vmem:[#allocation5 + $0x5e0] ss:$16 sps:$4 sm:$0xff]   ;;  %v3500_v46 = vld [vmem:[#allocation5 + $0x5e8] ss:$16 sps:$4 sm:$0xff]  }
  0xc5   : > { %1648 = vmatpush1.bf16.msra.mxu0 %v3347_v47  ;;  %1932 = vmatpush1.bf16.msra.mxu1 %v3350_v48  ;;  %v3422_v47 = vld [vmem:[#allocation5 + $0x448] ss:$16 sps:$4 sm:$0xff]   ;;  %v3427_v48 = vld [vmem:[#allocation5 + $0x464] ss:$16 sps:$4 sm:$0xff]  }
  0xc6   : > { %1649 = vmatprep.subr.bf16.mxu0 %v3355_v49  ;;  %1933 = vmatprep.subr.bf16.mxu1 %v3358_v50  ;;  %v3430_v49 = vld [vmem:[#allocation5 + $0x46c] ss:$16 sps:$4 sm:$0xff]   ;;  %v3425_v50 = vld [vmem:[#allocation5 + $0x460] ss:$16 sps:$4 sm:$0xff]  }
  0xc7   : > { %1667 = vmatprep.mubr.bf16.mxu0 %v328_v55  ;;  %1951 = vmatprep.mubr.bf16.mxu1 %v328_v55  ;;  %v3433_v55 = vld [vmem:[#allocation5 + $0x484] ss:$16 sps:$4 sm:$0xff]  }
  0xc9   : > { %1650 = vmatpush1.bf16.msra.mxu0 %v3353_v54  ;;  %1934 = vmatpush1.bf16.msra.mxu1 %v3356_v56  ;;  %v313_v54 = vld [vmem:[%s3918_s8 + $0x128] sm:$0xff] }
  0xca   : > { %1651 = vmatprep.subr.bf16.mxu0 %v3361_v57  ;;  %1935 = vmatprep.subr.bf16.mxu1 %v3364_v58  ;;  %v3436_v56 = vld [vmem:[#allocation5 + $0x48c] ss:$16 sps:$4 sm:$0xff]   ;;  %v341_v57 = vpack.c.bf16 %v313_v54, %v306_v53  ;;  %v3503_v54 = vld [vmem:[#allocation5 + $0x600] ss:$16 sps:$4 sm:$0xff]  }
  0xcb   : > { %v321_v58 = vld [vmem:[%s3918_s8 + $0x168] sm:$0xff] }
  0xcd   : > { %1652 = vmatpush1.bf16.msra.mxu0 %v3359_v59  ;;  %1936 = vmatpush1.bf16.msra.mxu1 %v3362_v60  ;;  %v3431_v59 = vld [vmem:[#allocation5 + $0x480] ss:$16 sps:$4 sm:$0xff]   ;;  %v3434_v60 = vld [vmem:[#allocation5 + $0x488] ss:$16 sps:$4 sm:$0xff]  }
  0xce   : > { %1653 = vmatprep.subr.bf16.mxu0 %v3367_v61  ;;  %1937 = vmatprep.subr.bf16.mxu1 %v3370_v62  ;;  %v3439_v61 = vld [vmem:[#allocation5 + $0x4a4] ss:$16 sps:$4 sm:$0xff]   ;;  %v3442_v62 = vld [vmem:[#allocation5 + $0x4ac] ss:$16 sps:$4 sm:$0xff]  }
  0xd1   : > { %1654 = vmatpush1.bf16.msra.mxu0 %v3365_v63  ;;  %1938 = vmatpush1.bf16.msra.mxu1 %v3368_v0  ;;  %v3437_v63 = vld [vmem:[#allocation5 + $0x4a0] ss:$16 sps:$4 sm:$0xff]   ;;  %v3440_v0 = vld [vmem:[#allocation5 + $0x4a8] ss:$16 sps:$4 sm:$0xff]  }
  0xd2   : > { %1655 = vmatprep.subr.bf16.mxu0 %v3373_v1  ;;  %1939 = vmatprep.subr.bf16.mxu1 %v3376_v2  ;;  %v349_v1 = vpack.c.bf16 %v321_v58, %v321_v58  ;;  %v3445_v2 = vld [vmem:[#allocation5 + $0x4c4] ss:$16 sps:$4 sm:$0xff]  }
  0xd3   : > { %v3510_v58 = vld [vmem:[#allocation7 + $0xc0] sm:$0xff]  }
  0xd5   : > { %1656 = vmatpush1.bf16.msra.mxu0 %v3371_v3  ;;  %1940 = vmatpush1.bf16.msra.mxu1 %v3374_v4  ;;  %v320_v3 = vld [vmem:[%s3918_s8 + $0x160] sm:$0xff] }
  0xd6   : > { %1657 = vmatprep.subr.bf16.mxu0 %v3379_v5  ;;  %1941 = vmatprep.subr.bf16.mxu1 %v3382_v6  ;;  %v3448_v4 = vld [vmem:[#allocation5 + $0x4cc] ss:$16 sps:$4 sm:$0xff]   ;;  %v3443_v5 = vld [vmem:[#allocation5 + $0x4c0] ss:$16 sps:$4 sm:$0xff]   ;;  %v3446_v6 = vld [vmem:[#allocation5 + $0x4c8] ss:$16 sps:$4 sm:$0xff]  }
  0xd9   : > { %1658 = vmatpush1.bf16.msra.mxu0 %v3377_v7  ;;  %1942 = vmatpush1.bf16.msra.mxu1 %v3380_v8  ;;  %v281_v7 = vld [vmem:[%s3918_s8 + $0x28] sm:$0xff]  ;;  %v348_v8 = vpack.c.bf16 %v320_v3, %v320_v3  ;;  %v323_v3 = vld [vmem:[%s3918_s8 + $0x178] sm:$0xff] }
  0xda   : > { %1659 = vmatprep.subr.bf16.mxu0 %v3385_v9  ;;  %1943 = vmatprep.subr.bf16.mxu1 %v3388_v10  ;;  %v288_v9 = vld [vmem:[%s3918_s8 + $0x60] sm:$0xff] }
  0xdb   : > { %v3451_v10 = vld [vmem:[#allocation5 + $0x4e4] ss:$16 sps:$4 sm:$0xff]  }
  0xdd   : > { %1660 = vmatpush1.bf16.msra.mxu0 %v3383_v11  ;;  %1944 = vmatpush1.bf16.msra.mxu1 %v3386_v12  ;;  %v3454_v11 = vld [vmem:[#allocation5 + $0x4ec] ss:$16 sps:$4 sm:$0xff]   ;;  %v3449_v12 = vld [vmem:[#allocation5 + $0x4e0] ss:$16 sps:$4 sm:$0xff]  }
  0xde   : > { %1661 = vmatprep.subr.bf16.mxu0 %v3391_v13  ;;  %1945 = vmatprep.subr.bf16.mxu1 %v3394_v14  ;;  %v330_v13 = vpack.c.bf16 %v288_v9, %v281_v7  ;;  %v3452_v14 = vld [vmem:[#allocation5 + $0x4e8] ss:$16 sps:$4 sm:$0xff]  }
  0xdf   : > { %v282_v9 = vld [vmem:[%s3918_s8 + $0x30] sm:$0xff] }
  0xe1   : > { %1662 = vmatpush1.bf16.msra.mxu0 %v3389_v15  ;;  %1946 = vmatpush1.bf16.msra.mxu1 %v3392_v16  ;;  %v3457_v15 = vld [vmem:[#allocation5 + $0x504] ss:$16 sps:$4 sm:$0xff]   ;;  %v3460_v16 = vld [vmem:[#allocation5 + $0x50c] ss:$16 sps:$4 sm:$0xff]  }
  0xe2   : > { %1663 = vmatprep.subr.bf16.mxu0 %v3397_v17  ;;  %1947 = vmatprep.subr.bf16.mxu1 %v3400_v18  ;;  %v3455_v17 = vld [vmem:[#allocation5 + $0x500] ss:$16 sps:$4 sm:$0xff]   ;;  %v3458_v18 = vld [vmem:[#allocation5 + $0x508] ss:$16 sps:$4 sm:$0xff]  }
  0xe5   : > { %1664 = vmatpush1.bf16.msra.mxu0 %v3395_v19  ;;  %1948 = vmatpush1.bf16.msra.mxu1 %v3398_v20  ;;  %v3463_v19 = vld [vmem:[#allocation5 + $0x524] ss:$16 sps:$4 sm:$0xff]   ;;  %v3466_v20 = vld [vmem:[#allocation5 + $0x52c] ss:$16 sps:$4 sm:$0xff]  }
  0xe6   : > { %1665 = vmatprep.subr.bf16.mxu0 %v3403_v21  ;;  %1949 = vmatprep.subr.bf16.mxu1 %v3406_v22  ;;  %v3461_v21 = vld [vmem:[#allocation5 + $0x520] ss:$16 sps:$4 sm:$0xff]   ;;  %v3464_v22 = vld [vmem:[#allocation5 + $0x528] ss:$16 sps:$4 sm:$0xff]  }
  0xe9   : > { %1666 = vmatpush1.bf16.msra.mxu0 %v3401_v23  ;;  %1950 = vmatpush1.bf16.msra.mxu1 %v3404_v24  ;;  %v3469_v23 = vld [vmem:[#allocation5 + $0x544] ss:$16 sps:$4 sm:$0xff]   ;;  %v3472_v24 = vld [vmem:[#allocation5 + $0x54c] ss:$16 sps:$4 sm:$0xff]  }
  0xea   : > { %1706 = vmatprep.subr.bf16.mxu0 %v3409_v27  ;;  %1990 = vmatprep.subr.bf16.mxu1 %v3412_v28  ;;  %v3475_v27 = vld [vmem:[#allocation5 + $0x564] ss:$16 sps:$4 sm:$0xff]   ;;  %v3478_v28 = vld [vmem:[#allocation5 + $0x56c] ss:$16 sps:$4 sm:$0xff]  }
  0xec   : > { %1668 = vmatmul.mubr.bf16.vlgmr.msra.gmra.mrb[0].mxu0 %v327_v30  ;;  %1952 = vmatmul.mubr.bf16.vlgmr.msra.gmra.mrb[0].mxu1 %v327_v30  ;;  %v3476_v30 = vld [vmem:[#allocation5 + $0x568] ss:$16 sps:$4 sm:$0xff]  }
  0xed   : > { %1707 = vmatpush1.bf16.msra.mxu0 %v3407_v32  ;;  %1991 = vmatpush1.bf16.msra.mxu1 %v3410_v33  ;;  %v3484_v32 = vld [vmem:[#allocation5 + $0x58c] ss:$16 sps:$4 sm:$0xff]   ;;  %v3479_v33 = vld [vmem:[#allocation5 + $0x580] ss:$16 sps:$4 sm:$0xff]  }
  0xee   : > { %1708 = vmatprep.subr.bf16.mxu0 %v3415_v34  ;;  %1992 = vmatprep.subr.bf16.mxu1 %v3418_v35  ;;  %v3482_v34 = vld [vmem:[#allocation5 + $0x588] ss:$16 sps:$4 sm:$0xff]   ;;  %v3487_v35 = vld [vmem:[#allocation5 + $0x5a4] ss:$16 sps:$4 sm:$0xff]  }
  0xef   : > { %1677 = vmatprep.mubr.bf16.mxu0 %v335_v37  ;;  %1961 = vmatprep.mubr.bf16.mxu1 %v335_v37  ;;  %v3485_v37 = vld [vmem:[#allocation5 + $0x5a0] ss:$16 sps:$4 sm:$0xff]  }
  0xf1   : > { %1709 = vmatpush1.bf16.msra.mxu0 %v3413_v36  ;;  %1993 = vmatpush1.bf16.msra.mxu1 %v3416_v38  ;;  %v3490_v36 = vld [vmem:[#allocation5 + $0x5ac] ss:$16 sps:$4 sm:$0xff]   ;;  %v3488_v38 = vld [vmem:[#allocation5 + $0x5a8] ss:$16 sps:$4 sm:$0xff]  }
  0xf2   : > { %1710 = vmatprep.subr.bf16.mxu0 %v3421_v39  ;;  %1994 = vmatprep.subr.bf16.mxu1 %v3424_v42  ;;  %v3493_v39 = vld [vmem:[#allocation5 + $0x5c4] ss:$16 sps:$4 sm:$0xff]   ;;  %v3494_v42 = vld [vmem:[#allocation5 + $0x5c8] ss:$16 sps:$4 sm:$0xff]  }
  0xf4   : > { %1678 = vmatmul.mubr.bf16.gmra.mrb[4].mxu0 %v334_v44  ;;  %1962 = vmatmul.mubr.bf16.gmra.mrb[4].mxu1 %v334_v44  ;;  %v3502_v44 = vld [vmem:[#allocation5 + $0x5ec] ss:$16 sps:$4 sm:$0xff]  }
  0xf5   : > { %1711 = vmatpush1.bf16.msra.mxu0 %v3419_v43  ;;  %1995 = vmatpush1.bf16.msra.mxu1 %v3422_v47  ;;  %v3499_v43 = vld [vmem:[#allocation5 + $0x5e4] ss:$16 sps:$4 sm:$0xff]  }
  0xf6   : > { %1712 = vmatprep.subr.bf16.mxu0 %v3427_v48  ;;  %1996 = vmatprep.subr.bf16.mxu1 %v3430_v49  ;;  %v280_v47 = vld [vmem:[%s3918_s8 + $0x20] sm:$0xff]  ;;  %v287_v48 = vld [vmem:[%s3918_s8 + $0x58] sm:$0xff] }
  0xf7   : > { %1687 = vmatprep.mubr.bf16.mxu0 %v342_v51  ;;  %1971 = vmatprep.mubr.bf16.mxu1 %v342_v51  ;;  %v3505_v49 = vld [vmem:[#allocation5 + $0x604] ss:$16 sps:$4 sm:$0xff]   ;;  %v329_v53 = vpack.c.bf16 %v287_v48, %v280_v47  ;;  %v3538_v47 = vld [vmem:[#allocation7 + $0xf8] sm:$0xff]  }
  0xf8   : > { %v295_v51 = vld [vmem:[%s3918_s8 + $0x98] sm:$0xff]  ;;  %v3539_v48 = vld [vmem:[#allocation7 + $0x38] sm:$0xff]  }
  0xf9   : > { %1713 = vmatpush1.bf16.msra.mxu0 %v3425_v50  ;;  %1997 = vmatpush1.bf16.msra.mxu1 %v3428_v52  ;;  %v3508_v50 = vld [vmem:[#allocation5 + $0x60c] ss:$16 sps:$4 sm:$0xff]  }
  0xfa   : > { %1714 = vmatprep.subr.bf16.mxu0 %v3433_v55  ;;  %1998 = vmatprep.subr.bf16.mxu1 %v3436_v56  ;;  %v302_v52 = vld [vmem:[%s3918_s8 + $0xd0] sm:$0xff] }
  0xfb   : > { %v3506_v55 = vld [vmem:[#allocation5 + $0x608] ss:$16 sps:$4 sm:$0xff]   ;;  %v337_v56 = vpack.c.bf16 %v302_v52, %v295_v51 }
  0xfc   : > { %1688 = vmatmul.mubr.bf16.gmra.mrb[8].mxu0 %v341_v57  ;;  %1972 = vmatmul.mubr.bf16.gmra.mrb[8].mxu1 %v341_v57  ;;  %v3509_v57 = vld [vmem:[#allocation7 + $0x40] sm:$0xff]  }
  0xfd   : > { %1715 = vmatpush1.bf16.msra.mxu0 %v3431_v59  ;;  %1999 = vmatpush1.bf16.msra.mxu1 %v3434_v60  ;;  %v294_v59 = vld [vmem:[%s3918_s8 + $0x90] sm:$0xff]  ;;  %v301_v60 = vld [vmem:[%s3918_s8 + $0xc8] sm:$0xff] }
  0xfe   : > { %1716 = vmatprep.subr.bf16.mxu0 %v3439_v61  ;;  %2000 = vmatprep.subr.bf16.mxu1 %v3442_v62  ;;  %v309_v61 = vld [vmem:[%s3918_s8 + $0x108] sm:$0xff]  ;;  %v316_v62 = vld [vmem:[%s3918_s8 + $0x140] sm:$0xff] }
  0xff   : > { %1697 = vmatprep.mubr.bf16.mxu0 %v349_v1  ;;  %1981 = vmatprep.mubr.bf16.mxu1 %v349_v1  ;;  %v308_v1 = vld [vmem:[%s3918_s8 + $0x100] sm:$0xff] }
 0x101   : > { %1717 = vmatpush1.bf16.msra.mxu0 %v3437_v63  ;;  %2001 = vmatpush1.bf16.msra.mxu1 %v3440_v0  ;;  %v336_v63 = vpack.c.bf16 %v301_v60, %v294_v59  ;;  %v344_v0 = vpack.c.bf16 %v316_v62, %v309_v61 }
 0x102   : > { %1718 = vmatprep.subr.bf16.mxu0 %v3445_v2  ;;  %2002 = vmatprep.subr.bf16.mxu1 %v3448_v4  ;;  %v315_v2 = vld [vmem:[%s3918_s8 + $0x138] sm:$0xff] }
 0x103   : > { %v343_v4 = vpack.c.bf16 %v315_v2, %v308_v1 }
 0x104   : > { %1698 = vmatmul.mubr.bf16.gmra.mrb[12].mxu0 %v348_v8  ;;  %1982 = vmatmul.mubr.bf16.gmra.mrb[12].mxu1 %v348_v8  ;;  %v3708_v8 = vmov 0  }
 0x105   : > { %1719 = vmatpush1.bf16.msra.mxu0 %v3443_v5  ;;  %2003 = vmatpush1.bf16.msra.mxu1 %v3446_v6  ;;  %v351_v5 = vpack.c.bf16 %v323_v3, %v323_v3  ;;  %v322_v6 = vld [vmem:[%s3918_s8 + $0x170] sm:$0xff] }
 0x106   : > { %1720 = vmatprep.subr.bf16.mxu0 %v3451_v10  ;;  %2004 = vmatprep.subr.bf16.mxu1 %v3454_v11  ;;  %v350_v7 = vpack.c.bf16 %v322_v6, %v322_v6  ;;  %v289_v10 = vld [vmem:[%s3918_s8 + $0x68] sm:$0xff] }
 0x107   : > { %1738 = vmatprep.mubr.bf16.mxu0 %v330_v13  ;;  %2022 = vmatprep.mubr.bf16.mxu1 %v330_v13  ;;  %v331_v11 = vpack.c.bf16 %v289_v10, %v282_v9  ;;  %v3512_v13 = vld [vmem:[#allocation7 + $0x80] sm:$0xff]  }
 0x109   : > { %1721 = vmatpush1.bf16.msra.mxu0 %v3449_v12  ;;  %2005 = vmatpush1.bf16.msra.mxu1 %v3452_v14  ;;  %v3511_v12 = vld [vmem:[#allocation7] sm:$0xff]   ;;  %v3513_v14 = vld [vmem:[#allocation7 + $0x48] sm:$0xff]  }
 0x10a   : > { %1722 = vmatprep.subr.bf16.mxu0 %v3457_v15  ;;  %2006 = vmatprep.subr.bf16.mxu1 %v3460_v16  ;;  %v3514_v15 = vld [vmem:[#allocation7 + $0xc8] sm:$0xff]   ;;  %v296_v16 = vld [vmem:[%s3918_s8 + $0xa0] sm:$0xff] }
 0x10d   : > { %1723 = vmatpush1.bf16.msra.mxu0 %v3455_v17  ;;  %2007 = vmatpush1.bf16.msra.mxu1 %v3458_v18  ;;  %v303_v17 = vld [vmem:[%s3918_s8 + $0xd8] sm:$0xff] }
 0x10e   : > { %1724 = vmatprep.subr.bf16.mxu0 %v3463_v19  ;;  %2008 = vmatprep.subr.bf16.mxu1 %v3466_v20  ;;  %v3515_v18 = vld [vmem:[#allocation7 + $0x8] sm:$0xff]   ;;  %v3517_v20 = vld [vmem:[#allocation7 + $0x50] sm:$0xff]  }
 0x10f   : > { %v3516_v19 = vld [vmem:[#allocation7 + $0x88] sm:$0xff]  }
 0x111   : > { %1725 = vmatpush1.bf16.msra.mxu0 %v3461_v21  ;;  %2009 = vmatpush1.bf16.msra.mxu1 %v3464_v22  ;;  %v3518_v21 = vld [vmem:[#allocation7 + $0xd0] sm:$0xff]   ;;  %v338_v22 = vpack.c.bf16 %v303_v17, %v296_v16 }
 0x112   : > { %1726 = vmatprep.subr.bf16.mxu0 %v3469_v23  ;;  %2010 = vmatprep.subr.bf16.mxu1 %v3472_v24  ;;  %v3519_v23 = vld [vmem:[#allocation7 + $0x10] sm:$0xff]  }
 0x113   : > { %v3520_v24 = vld [vmem:[#allocation7 + $0x90] sm:$0xff]  }
 0x115   : > { %1727 = vmatpush1.bf16.msra.mxu0 %v3467_v25  ;;  %2011 = vmatpush1.bf16.msra.mxu1 %v3470_v26  ;;  %v3521_v25 = vld [vmem:[#allocation7 + $0x58] sm:$0xff]  }
 0x116   : > { %1728 = vmatprep.subr.bf16.mxu0 %v3475_v27  ;;  %2012 = vmatprep.subr.bf16.mxu1 %v3478_v28  ;;  %v3522_v26 = vld [vmem:[#allocation7 + $0xd8] sm:$0xff]   ;;  %v310_v27 = vld [vmem:[%s3918_s8 + $0x110] sm:$0xff] }
 0x117   : > { %v317_v28 = vld [vmem:[%s3918_s8 + $0x148] sm:$0xff] }
 0x119   : > { %1729 = vmatpush1.bf16.msra.mxu0 %v3473_v29  ;;  %2013 = vmatpush1.bf16.msra.mxu1 %v3476_v30  ;;  %v3523_v29 = vld [vmem:[#allocation7 + $0x18] sm:$0xff]  }
 0x11a   : > { %1730 = vmatprep.subr.bf16.mxu0 %v3481_v31  ;;  %2014 = vmatprep.subr.bf16.mxu1 %v3484_v32  ;;  %v3524_v30 = vld [vmem:[#allocation7 + $0x98] sm:$0xff]   ;;  %v3525_v31 = vld [vmem:[#allocation7 + $0x60] sm:$0xff]  }
 0x11b   : > { %v3526_v32 = vld [vmem:[#allocation7 + $0xe0] sm:$0xff]  }
 0x11d   : > { %1731 = vmatpush1.bf16.msra.mxu0 %v3479_v33  ;;  %2015 = vmatpush1.bf16.msra.mxu1 %v3482_v34  ;;  %v345_v33 = vpack.c.bf16 %v317_v28, %v310_v27  ;;  %v3527_v34 = vld [vmem:[#allocation7 + $0x20] sm:$0xff]  }
 0x11e   : > { %1732 = vmatprep.subr.bf16.mxu0 %v3487_v35  ;;  %2016 = vmatprep.subr.bf16.mxu1 %v3490_v36  ;;  %v3528_v35 = vld [vmem:[#allocation7 + $0xa0] sm:$0xff]   ;;  %v3529_v36 = vld [vmem:[#allocation7 + $0x68] sm:$0xff]  }
 0x121   : > { %1733 = vmatpush1.bf16.msra.mxu0 %v3485_v37  ;;  %2017 = vmatpush1.bf16.msra.mxu1 %v3488_v38  ;;  %v3530_v37 = vld [vmem:[#allocation7 + $0xe8] sm:$0xff]   ;;  %v324_v38 = vld [vmem:[%s3918_s8 + $0x180] sm:$0xff]  ;;  %s3633_s8 = scalar_lea.vmem %s3632_s7, 1792 }
 0x122   : > { %1734 = vmatprep.subr.bf16.mxu0 %v3493_v39  ;;  %2018 = vmatprep.subr.bf16.mxu1 %v3496_v40  ;;  %v352_v39 = vpack.c.bf16 %v324_v38, %v324_v38  ;;  %v3531_v40 = vld [vmem:[#allocation7 + $0x28] sm:$0xff]   ;;  %p3635_p7 = scmp.lt.s32.totalorder %s3633_s8, %s3627_s15 }
 0x124   : > { %p3636_p12 = por %p3635_p7, %p3634_p5 }
 0x125   : > { %1735 = vmatpush1.bf16.msra.mxu0 %v3491_v41  ;;  %2019 = vmatpush1.bf16.msra.mxu1 %v3494_v42  ;;  %v3532_v41 = vld [vmem:[#allocation7 + $0xa8] sm:$0xff]   ;;  %v3533_v42 = vld [vmem:[#allocation7 + $0x70] sm:$0xff]  }
 0x126   : > { %1736 = vmatprep.subr.bf16.mxu0 %v3499_v43  ;;  %2020 = vmatprep.subr.bf16.mxu1 %v3502_v44  ;;  %v3534_v43 = vld [vmem:[#allocation7 + $0xf0] sm:$0xff]   ;;  %p3637_p2 = pnand %p3636_p12, %p3630_p3 }
 0x127   : > { %v3535_v44 = vld [vmem:[#allocation7 + $0x30] sm:$0xff]  }
 0x129   : > { %1737 = vmatpush1.bf16.msra.mxu0 %v3497_v45  ;;  %2021 = vmatpush1.bf16.msra.mxu1 %v3500_v46  ;;  %v3536_v45 = vld [vmem:[#allocation7 + $0xb0] sm:$0xff]   ;;  %v3537_v46 = vld [vmem:[#allocation7 + $0x78] sm:$0xff]  }
 0x12a   : > { %1777 = vmatprep.subr.bf16.mxu0 %v3505_v49  ;;  %2061 = vmatprep.subr.bf16.mxu1 %v3508_v50  ;;  %v3540_v49 = vld [vmem:[#allocation7 + $0xb8] sm:$0xff]   ;;  %v551_v50 = vlaneseq }
 0x12c   : > { %1739 = vmatmul.mubr.bf16.vlgmr.msra.gmra.mrb[0].mxu0 %v329_v53  ;;  %2023 = vmatmul.mubr.bf16.vlgmr.msra.gmra.mrb[0].mxu1 %v329_v53  ;;  %v552_v51 = vshrl.u32 %v551_v50, 7 }
 0x12d   : > { %1778 = vmatpush1.bf16.msra.mxu0 %v3503_v54  ;;  %2062 = vmatpush1.bf16.msra.mxu1 %v3506_v55  ;;  %v549_v54 = vld [vmem:[%s4099_s2] sm:$0xf] }
 0x12e   : > { %1748 = vmatprep.mubr.bf16.mxu0 %v337_v56  ;;  %2032 = vmatprep.mubr.bf16.mxu1 %v337_v56  ;;  %v553_v52 = vsub.s32 0, %v552_v51  ;;  %v561_v53 = vsub.s32 2, %v552_v51  ;;  %v557_v55 = vsub.s32 1, %v552_v51  ;;  %v565_v56 = vsub.s32 3, %v552_v51 }
 0x12f   : > { %2930 = vmatprep.subr.bf16.mxu0 %v3509_v57  ;;  %2970 = vmatprep.subr.bf16.mxu1 %v3510_v58 }
 0x130   : > { %v3988_v57 = vrot.slane %v549_v54, %v553_v52  ;;  %v3990_v58 = vrot.slane %v549_v54, %v561_v53  ;;  %v3992_v59 = vrot.slane %v549_v54, %v557_v55  ;;  %v3994_v60 = vrot.slane %v549_v54, %v565_v56 }
 0x134   : > { %1749 = vmatmul.mubr.bf16.gmra.mrb[4].mxu0 %v336_v63  ;;  %2033 = vmatmul.mubr.bf16.gmra.mrb[4].mxu1 %v336_v63 }
 0x135   : > { %1758 = vmatprep.mubr.bf16.mxu0 %v344_v0  ;;  %2042 = vmatprep.mubr.bf16.mxu1 %v344_v0 }
 0x13c   : > { %1759 = vmatmul.mubr.bf16.gmra.mrb[8].mxu0 %v343_v4  ;;  %2043 = vmatmul.mubr.bf16.gmra.mrb[8].mxu1 %v343_v4 }
 0x13d   : > { %1768 = vmatprep.mubr.bf16.mxu0 %v351_v5  ;;  %2052 = vmatprep.mubr.bf16.mxu1 %v351_v5 }
 0x144   : > { %1769 = vmatmul.mubr.bf16.gmra.mrb[12].mxu0 %v350_v7  ;;  %2053 = vmatmul.mubr.bf16.gmra.mrb[12].mxu1 %v350_v7 }
 0x145   : > { %1809 = vmatprep.mubr.bf16.mxu0 %v3708_v8  ;;  %2093 = vmatprep.mubr.bf16.mxu1 %v3708_v8 }
 0x14c   : > { %2885 = vmatmul.mubr.msk.bf16.vlgmr.msra.gmra.mrb[0].mxu0 %vm1551_vm0, %v331_v11  ;;  %2889 = vmatmul.mubr.msk.bf16.vlgmr.msra.gmra.mrb[0].mxu1 %vm1551_vm0, %v331_v11 }
 0x14d   : > { %1819 = vmatprep.mubr.bf16.mxu0 %v3708_v8  ;;  %2103 = vmatprep.mubr.bf16.mxu1 %v3708_v8 }
 0x14e   : > { %2931 = vmatpush3.bf16.msra.mxu0 %v3511_v12  ;;  %2971 = vmatpush3.bf16.msra.mxu1 %v3512_v13 }
 0x14f   : > { %2932 = vmatprep.subr.bf16.mxu0 %v3513_v14  ;;  %2972 = vmatprep.subr.bf16.mxu1 %v3514_v15 }
 0x152   : > { %2933 = vmatpush3.bf16.msra.mxu0 %v3515_v18  ;;  %2973 = vmatpush3.bf16.msra.mxu1 %v3516_v19 }
 0x153   : > { %2934 = vmatprep.subr.bf16.mxu0 %v3517_v20  ;;  %2974 = vmatprep.subr.bf16.mxu1 %v3518_v21 }
 0x154   : > { %2886 = vmatmul.mubr.msk.bf16.gmra.mrb[4].mxu0 %vm1551_vm0, %v338_v22  ;;  %2890 = vmatmul.mubr.msk.bf16.gmra.mrb[4].mxu1 %vm1551_vm0, %v338_v22 }
 0x155   : > { %1829 = vmatprep.mubr.bf16.mxu0 %v3708_v8  ;;  %2113 = vmatprep.mubr.bf16.mxu1 %v3708_v8 }
 0x156   : > { %2935 = vmatpush3.bf16.msra.mxu0 %v3519_v23  ;;  %2975 = vmatpush3.bf16.msra.mxu1 %v3520_v24 }
 0x157   : > { %2936 = vmatprep.subr.bf16.mxu0 %v3521_v25  ;;  %2976 = vmatprep.subr.bf16.mxu1 %v3522_v26 }
 0x15a   : > { %2937 = vmatpush3.bf16.msra.mxu0 %v3523_v29  ;;  %2977 = vmatpush3.bf16.msra.mxu1 %v3524_v30 }
 0x15b   : > { %2938 = vmatprep.subr.bf16.mxu0 %v3525_v31  ;;  %2978 = vmatprep.subr.bf16.mxu1 %v3526_v32 }
 0x15c   : > { %2887 = vmatmul.mubr.msk.bf16.gmra.mrb[8].mxu0 %vm1551_vm0, %v345_v33  ;;  %2891 = vmatmul.mubr.msk.bf16.gmra.mrb[8].mxu1 %vm1551_vm0, %v345_v33 }
 0x15d   : > { %1839 = vmatprep.mubr.bf16.mxu0 %v3708_v8  ;;  %2123 = vmatprep.mubr.bf16.mxu1 %v3708_v8 }
 0x15e   : > { %2939 = vmatpush3.bf16.msra.mxu0 %v3527_v34  ;;  %2979 = vmatpush3.bf16.msra.mxu1 %v3528_v35 }
 0x15f   : > { %2940 = vmatprep.subr.bf16.mxu0 %v3529_v36  ;;  %2980 = vmatprep.subr.bf16.mxu1 %v3530_v37 }
 0x162   : > { %2941 = vmatpush3.bf16.msra.mxu0 %v3531_v40  ;;  %2981 = vmatpush3.bf16.msra.mxu1 %v3532_v41 }
 0x163   : > { %2942 = vmatprep.subr.bf16.mxu0 %v3533_v42  ;;  %2982 = vmatprep.subr.bf16.mxu1 %v3534_v43 }
 0x164   : > { %2888 = vmatmul.mubr.msk.bf16.gmra.mrb[12].mxu0 %vm1551_vm0, %v352_v39  ;;  %2892 = vmatmul.mubr.msk.bf16.gmra.mrb[12].mxu1 %vm1551_vm0, %v352_v39 }
 0x166   : > { %2943 = vmatpush3.bf16.msra.mxu0 %v3535_v44  ;;  %2983 = vmatpush3.bf16.msra.mxu1 %v3536_v45 }
 0x167   : > { %2944 = vmatprep.subr.bf16.mxu0 %v3537_v46  ;;  %2984 = vmatprep.subr.bf16.mxu1 %v3538_v47 }
 0x16a   : > { %2945 = vmatpush3.bf16.msra.mxu0 %v3539_v48  ;;  %2985 = vmatpush3.bf16.msra.mxu1 %v3540_v49 }
 0x21f   : > { %v1811_v61 = vpop.f32.mrb[0].mxu0  ;;  %v2095_v62 = vpop.f32.mrb[0].mxu1 }
 0x220   : > { %v3010_v63 = vadd.f32 %v1811_v61, %v3988_v57  ;;  %v3024_v0 = vadd.f32 %v2095_v62, %v3990_v58  ;;  %v1813_v1 = vpop.f32.mrb[1].mxu0  ;;  %v2097_v2 = vpop.f32.mrb[1].mxu1 }
 0x221   : > { %v3011_v3 = vadd.f32 %v1813_v1, %v3992_v59  ;;  %v3025_v4 = vadd.f32 %v2097_v2, %v3994_v60  ;;  %v1815_v5 = vpop.f32.mrb[2].mxu0  ;;  %v2099_v6 = vpop.f32.mrb[2].mxu1 }
 0x222   : > { %v3012_v7 = vadd.f32 %v1815_v5, %v3988_v57  ;;  %v3026_v8 = vadd.f32 %v2099_v6, %v3990_v58  ;;  %v1817_v9 = vpop.f32.mrb[3].mxu0  ;;  %v2101_v10 = vpop.f32.mrb[3].mxu1  ;;  %v2132_v13 = vmax.f32 %v3010_v63, 0.0  ;;  %v2134_v14 = vmax.f32 %v3024_v0, 0.0 }
 0x223   : > { %v3013_v11 = vadd.f32 %v1817_v9, %v3992_v59  ;;  %v3027_v12 = vadd.f32 %v2101_v10, %v3994_v60  ;;  %v2133_v17 = vmax.f32 %v3011_v3, 0.0  ;;  %v2135_v18 = vmax.f32 %v3025_v4, 0.0 }
 0x224   : > { %v2136_v15 = vmax.f32 %v3012_v7, 0.0  ;;  %v2138_v16 = vmax.f32 %v3026_v8, 0.0 }
 0x225   : > { %v2137_v19 = vmax.f32 %v3013_v11, 0.0  ;;  %v2139_v20 = vmax.f32 %v3027_v12, 0.0 }
 0x226   : > { %v2160_v21 = vpack.c.bf16 %v2136_v15, %v2132_v13  ;;  %v2162_v22 = vpack.c.bf16 %v2138_v16, %v2134_v14 }
 0x227   : > { %v2161_v23 = vpack.c.bf16 %v2137_v19, %v2133_v17  ;;  %v2163_v24 = vpack.c.bf16 %v2139_v20, %v2135_v18  ;;  %v1821_v25 = vpop.f32.mrb[4].mxu0  ;;  %v2105_v26 = vpop.f32.mrb[4].mxu1 }
 0x228   : > { %v3014_v27 = vadd.f32 %v1821_v25, %v3988_v57  ;;  %v3028_v28 = vadd.f32 %v2105_v26, %v3990_v58  ;;  %v1823_v29 = vpop.f32.mrb[5].mxu0  ;;  %v2107_v30 = vpop.f32.mrb[5].mxu1 }
 0x229   : > { %v3015_v31 = vadd.f32 %v1823_v29, %v3992_v59  ;;  %v3029_v32 = vadd.f32 %v2107_v30, %v3994_v60  ;;  %v1825_v33 = vpop.f32.mrb[6].mxu0  ;;  %v2109_v34 = vpop.f32.mrb[6].mxu1  ;;  %2471 = vmatprep.mubr.bf16.mxu0 %v2161_v23  ;;  %2535 = vmatprep.mubr.bf16.mxu1 %v2163_v24 }
 0x22a   : > { %v3016_v35 = vadd.f32 %v1825_v33, %v3988_v57  ;;  %v3030_v36 = vadd.f32 %v2109_v34, %v3990_v58  ;;  %v1827_v37 = vpop.f32.mrb[7].mxu0  ;;  %v2111_v38 = vpop.f32.mrb[7].mxu1  ;;  %2472 = vmatmul.mubr.bf16.vlgmr.msra.gmra.mrb[16].mxu0 %v2160_v21  ;;  %2536 = vmatmul.mubr.bf16.vlgmr.msra.gmra.mrb[16].mxu1 %v2162_v22  ;;  %v2140_v41 = vmax.f32 %v3014_v27, 0.0  ;;  %v2142_v42 = vmax.f32 %v3028_v28, 0.0 }
 0x22b   : > { %v3017_v39 = vadd.f32 %v1827_v37, %v3992_v59  ;;  %v3031_v40 = vadd.f32 %v2111_v38, %v3994_v60  ;;  %v2141_v45 = vmax.f32 %v3015_v31, 0.0  ;;  %v2143_v46 = vmax.f32 %v3029_v32, 0.0 }
 0x22c   : > { %v2144_v43 = vmax.f32 %v3016_v35, 0.0  ;;  %v2146_v44 = vmax.f32 %v3030_v36, 0.0 }
 0x22d   : > { %v2145_v47 = vmax.f32 %v3017_v39, 0.0  ;;  %v2147_v48 = vmax.f32 %v3031_v40, 0.0  ;;  %v4027_v39 = vld [vmem:[%s4101_s4] ss:$0 sm:$0xff] }
 0x22e   : > { %v2164_v49 = vpack.c.bf16 %v2144_v43, %v2140_v41  ;;  %v2166_v50 = vpack.c.bf16 %v2146_v44, %v2142_v42 }
 0x22f   : > { %v2165_v51 = vpack.c.bf16 %v2145_v47, %v2141_v45  ;;  %v2167_v52 = vpack.c.bf16 %v2147_v48, %v2143_v46  ;;  %v1831_v53 = vpop.f32.mrb[8].mxu0  ;;  %v2115_v54 = vpop.f32.mrb[8].mxu1 }
 0x230   : > { %v3018_v55 = vadd.f32 %v1831_v53, %v3988_v57  ;;  %v3032_v56 = vadd.f32 %v2115_v54, %v3990_v58  ;;  %v1833_v61 = vpop.f32.mrb[9].mxu0  ;;  %v2117_v62 = vpop.f32.mrb[9].mxu1 }
 0x231   : > { %v3019_v63 = vadd.f32 %v1833_v61, %v3992_v59  ;;  %v3033_v0 = vadd.f32 %v2117_v62, %v3994_v60  ;;  %v1835_v1 = vpop.f32.mrb[10].mxu0  ;;  %v2119_v2 = vpop.f32.mrb[10].mxu1  ;;  %2479 = vmatprep.mubr.bf16.mxu0 %v2165_v51  ;;  %2543 = vmatprep.mubr.bf16.mxu1 %v2167_v52 }
 0x232   : > { %v3020_v3 = vadd.f32 %v1835_v1, %v3988_v57  ;;  %v3034_v4 = vadd.f32 %v2119_v2, %v3990_v58  ;;  %v1837_v5 = vpop.f32.mrb[11].mxu0  ;;  %v2121_v6 = vpop.f32.mrb[11].mxu1  ;;  %2480 = vmatmul.mubr.bf16.gmra.mrb[20].mxu0 %v2164_v49  ;;  %2544 = vmatmul.mubr.bf16.gmra.mrb[20].mxu1 %v2166_v50  ;;  %v2148_v9 = vmax.f32 %v3018_v55, 0.0  ;;  %v2150_v10 = vmax.f32 %v3032_v56, 0.0 }
 0x233   : > { %v3021_v7 = vadd.f32 %v1837_v5, %v3992_v59  ;;  %v3035_v8 = vadd.f32 %v2121_v6, %v3994_v60  ;;  %v2149_v13 = vmax.f32 %v3019_v63, 0.0  ;;  %v2151_v14 = vmax.f32 %v3033_v0, 0.0 }
 0x234   : > { %v2152_v11 = vmax.f32 %v3020_v3, 0.0  ;;  %v2154_v12 = vmax.f32 %v3034_v4, 0.0 }
 0x235   : > { %v2153_v15 = vmax.f32 %v3021_v7, 0.0  ;;  %v2155_v16 = vmax.f32 %v3035_v8, 0.0 }
 0x236   : > { %v2168_v17 = vpack.c.bf16 %v2152_v11, %v2148_v9  ;;  %v2170_v18 = vpack.c.bf16 %v2154_v12, %v2150_v10 }
 0x237   : > { %v2169_v19 = vpack.c.bf16 %v2153_v15, %v2149_v13  ;;  %v2171_v20 = vpack.c.bf16 %v2155_v16, %v2151_v14  ;;  %v1841_v21 = vpop.f32.mrb[12].mxu0  ;;  %v2125_v22 = vpop.f32.mrb[12].mxu1 }
 0x238   : > { %v3022_v23 = vadd.f32 %v1841_v21, %v3988_v57  ;;  %v3036_v24 = vadd.f32 %v2125_v22, %v3990_v58  ;;  %v1843_v25 = vpop.f32.mrb[13].mxu0  ;;  %v2127_v26 = vpop.f32.mrb[13].mxu1 }
 0x239   : > { %v3023_v27 = vadd.f32 %v1843_v25, %v3992_v59  ;;  %v3037_v28 = vadd.f32 %v2127_v26, %v3994_v60  ;;  %v1845_v29 = vpop.f32.mrb[14].mxu0  ;;  %v2129_v30 = vpop.f32.mrb[14].mxu1  ;;  %2487 = vmatprep.mubr.bf16.mxu0 %v2169_v19  ;;  %2551 = vmatprep.mubr.bf16.mxu1 %v2171_v20 }
 0x23a   : > { %v1846_v31 = vpop.f32.mrb[15].mxu0  ;;  %v2130_v32 = vpop.f32.mrb[15].mxu1  ;;  %2488 = vmatmul.mubr.bf16.gmra.mrb[24].mxu0 %v2168_v17  ;;  %2552 = vmatmul.mubr.bf16.gmra.mrb[24].mxu1 %v2170_v18  ;;  %v2156_v57 = vmax.f32 %v3022_v23, 0.0  ;;  %v2158_v35 = vmax.f32 %v3036_v24, 0.0 }
 0x23b   : > { %v2157_v33 = vmax.f32 %v3023_v27, 0.0  ;;  %v2159_v34 = vmax.f32 %v3037_v28, 0.0 }
 0x23c   : > { %v2172_v59 = vpack.c.bf16 %v2156_v57, %v2156_v57  ;;  %v2174_v37 = vpack.c.bf16 %v2158_v35, %v2158_v35 }
 0x23d   : > { %v2173_v58 = vpack.c.bf16 %v2157_v33, %v2157_v33  ;;  %v2175_v36 = vpack.c.bf16 %v2159_v34, %v2159_v34 }
 0x23f   : > { %2495 = vmatprep.mubr.bf16.mxu0 %v2173_v58  ;;  %2559 = vmatprep.mubr.bf16.mxu1 %v2175_v36 }
 0x242   : > { %2496 = vmatmul.mubr.bf16.gmra.mrb[28].mxu0 %v2172_v59  ;;  %2560 = vmatmul.mubr.bf16.gmra.mrb[28].mxu1 %v2174_v37 }
 0x2fd   : > { %v2946_v60 = vpop.f32.mrb[16].mxu0  ;;  %v2986_v38 = vpop.f32.mrb[16].mxu1 }
 0x2fe   : > { %v2947_v40 = vpop.f32.mrb[17].mxu0  ;;  %v2987_v41 = vpop.f32.mrb[17].mxu1 }
 0x2ff   : > { %v2948_v42 = vadd.f32 %v2947_v40, %v2946_v60  ;;  %v2988_v43 = vadd.f32 %v2987_v41, %v2986_v38  ;;  %v2949_v44 = vpop.f32.mrb[18].mxu0  ;;  %v2989_v45 = vpop.f32.mrb[18].mxu1 }
 0x300   : > { %v2950_v46 = vpop.f32.mrb[19].mxu0  ;;  %v2990_v47 = vpop.f32.mrb[19].mxu1 }
 0x301   : > { %v2474_v48 = vadd.f32 %v2948_v42, %v4027_v39  ;;  %v2951_v49 = vadd.f32 %v2950_v46, %v2949_v44  ;;  %v2991_v50 = vadd.f32 %v2990_v47, %v2989_v45 }
 0x303   : > { %v2538_v51 = vadd.f32 %v2988_v43, %v2474_v48  ;;  %v2477_v52 = vadd.f32 %v2951_v49, %v4027_v39 }
 0x305   : > { %2567 = vst [vmem:[%s4032_s13] sm:$0xff] %v2538_v51  ;;  %v2541_v53 = vadd.f32 %v2991_v50, %v2477_v52  ;;  %v2952_v54 = vpop.f32.mrb[20].mxu0  ;;  %v2992_v55 = vpop.f32.mrb[20].mxu1 }
 0x306   : > { %v2953_v56 = vpop.f32.mrb[21].mxu0  ;;  %v2993_v61 = vpop.f32.mrb[21].mxu1 }
 0x307   : > { %2568 = vst [vmem:[%s4032_s13 + $0x8] sm:$0xff] %v2541_v53  ;;  %v2954_v62 = vadd.f32 %v2953_v56, %v2952_v54  ;;  %v2994_v63 = vadd.f32 %v2993_v61, %v2992_v55  ;;  %v2955_v0 = vpop.f32.mrb[22].mxu0  ;;  %v2995_v1 = vpop.f32.mrb[22].mxu1 }
 0x308   : > { %v2956_v2 = vpop.f32.mrb[23].mxu0  ;;  %v2996_v3 = vpop.f32.mrb[23].mxu1 }
 0x309   : > { %v2482_v4 = vadd.f32 %v2954_v62, %v4027_v39  ;;  %v2957_v5 = vadd.f32 %v2956_v2, %v2955_v0  ;;  %v2997_v6 = vadd.f32 %v2996_v3, %v2995_v1 }
 0x30b   : > { %v2546_v7 = vadd.f32 %v2994_v63, %v2482_v4  ;;  %v2485_v8 = vadd.f32 %v2957_v5, %v4027_v39 }
 0x30d   : > { %2569 = vst [vmem:[%s4032_s13 + $0x10] sm:$0xff] %v2546_v7  ;;  %v2549_v9 = vadd.f32 %v2997_v6, %v2485_v8  ;;  %v2958_v10 = vpop.f32.mrb[24].mxu0  ;;  %v2998_v11 = vpop.f32.mrb[24].mxu1 }
 0x30e   : > { %v2959_v12 = vpop.f32.mrb[25].mxu0  ;;  %v2999_v13 = vpop.f32.mrb[25].mxu1 }
 0x30f   : > { %2570 = vst [vmem:[%s4032_s13 + $0x18] sm:$0xff] %v2549_v9  ;;  %v2960_v14 = vadd.f32 %v2959_v12, %v2958_v10  ;;  %v3000_v15 = vadd.f32 %v2999_v13, %v2998_v11  ;;  %v2961_v16 = vpop.f32.mrb[26].mxu0  ;;  %v3001_v17 = vpop.f32.mrb[26].mxu1 }
 0x310   : > { %v2962_v18 = vpop.f32.mrb[27].mxu0  ;;  %v3002_v19 = vpop.f32.mrb[27].mxu1 }
 0x311   : > { %v2490_v20 = vadd.f32 %v2960_v14, %v4027_v39  ;;  %v2963_v21 = vadd.f32 %v2962_v18, %v2961_v16  ;;  %v3003_v22 = vadd.f32 %v3002_v19, %v3001_v17 }
 0x313   : > { %v2554_v23 = vadd.f32 %v3000_v15, %v2490_v20  ;;  %v2493_v24 = vadd.f32 %v2963_v21, %v4027_v39 }
 0x315   : > { %2571 = vst [vmem:[%s4032_s13 + $0x20] sm:$0xff] %v2554_v23  ;;  %v2557_v25 = vadd.f32 %v3003_v22, %v2493_v24  ;;  %v2964_v26 = vpop.f32.mrb[28].mxu0  ;;  %v3004_v27 = vpop.f32.mrb[28].mxu1 }
 0x316   : > { %v2965_v28 = vpop.f32.mrb[29].mxu0  ;;  %v3005_v29 = vpop.f32.mrb[29].mxu1 }
 0x317   : > { %2572 = vst [vmem:[%s4032_s13 + $0x28] sm:$0xff] %v2557_v25  ;;  %v2966_v30 = vadd.f32 %v2965_v28, %v2964_v26  ;;  %v3006_v31 = vadd.f32 %v3005_v29, %v3004_v27  ;;  %v2967_v32 = vpop.f32.mrb[30].mxu0  ;;  %v3007_v33 = vpop.f32.mrb[30].mxu1 }
 0x318   : > { %v2968_v34 = vpop.f32.mrb[31].mxu0  ;;  %v3008_v57 = vpop.f32.mrb[31].mxu1 }
 0x319   : > { %v2498_v35 = vadd.f32 %v2966_v30, %v4027_v39 }
 0x31b   : > { %v2562_v58 = vadd.f32 %v3006_v31, %v2498_v35 }
 0x31d   : > { %2573 = vst [vmem:[%s4032_s13 + $0x30] sm:$0xff] %v2562_v58 }
 0x31e   : > { %3640 = shalt.err (!%p3637_p2)
}
 0x31f   : > { %s3641_s24 = scalar_lea.hbm %s4052_s14, 896  ;;  %s3645_s11 = scalar_lea.hbm %s4102_s5, 1792 }
 0x320   : > { %p3642_p13 = scmp.ne.s32.totalorder %s4052_s14, %s3641_s24  ;;  %p3646_p4 = scmp.lt.u32.totalorder %s4052_s14, %s4102_s5 }
 0x321   : > { %p3647_p9 = scmp.lt.u32.totalorder %s3645_s11, %s3641_s24  ;;  %p3649_p11 = scmp.lt.u32.totalorder %s3641_s24, %s4052_s14 }
 0x322   : > { %p3643_p6 = pnand %p3642_p13, %p4116_p0 }
 0x323   : > { %p3648_p8 = por %p3647_p9, %p3646_p4 }
 0x324   : > { %p3644_p10 = pneg %p3643_p6 }
 0x325   : > { %p3650_p1 = por %p3649_p11, %p3648_p8 }
 0x327   : > { %p3651_p3 = pnand %p3650_p1, %p3644_p10 }
 0x329   : > { %3654 = shalt.err (!%p3651_p3)
}
 0x32a   : > { %s3710_s6 = smov 128   ;;  %s3711_s9 = smov 8  }
 0x32b   : > { %3148 = dma.vmem_to_hbm [thread:$0]  (%p4116_p0), %s4046_s29, 896, %s4052_s14, %s2575_s22, %s3710_s6, %s3710_s6, %s3711_s9  }
 0x32c PF: > { %s2603_s28 = sand.u32 1, %s3685_s18   ;;  %p4117_p5 = scmp.ne.s32.totalorder %s4107_s25, 0 }
 0x32d   : > { %p4118_p7 = scmp.ge.s32.totalorder %s3697_s21, 2  ;;  %s2604_s15 = scalar_lea.sflag [#allocation4], %s2603_s28 }
 0x32f   : > { %p3162_p12 = pnand %p4118_p7, %p4117_p5 }
 0x331   : > { %3680 = dma.done.wait (!%p3162_p12), %s2604_s15, 896  }
 0x332   : > { %3682 = vsyncadd (!%p3162_p12), %s2604_s15, 4294966400  ;;  %p19_p2 = scmp.ge.s32.totalorder %s3852_s16, 4   ;;  %s4119_s18 = smov %s3689_s19 }
 0x333   : > { %s4120_s19 = smov %s3693_s20  ;;  %s4121_s20 = smov %s3862_s27 }
 0x334   : > { %s4122_s21 = smov %s3852_s16  ;;  %21 = sbr.rel (!%p19_p2) target bundleno = 6 (0x6), region = 93 }
 0x33b   :  { %2609 = vsyncpa [#allocation3], 1 }
 0x33c   :  { %2611 = vsyncpa [#allocation3 + $0x1], 1 }
 0x33d   :  { %2612 = vsyncpa [#allocation6], 1 }
 0x33e   :  { %2613 = vsyncpa [#allocation4], 1 }
 0x33f   :  { %2615 = vsyncpa [#allocation4 + $0x1], 1 }

</bundles_post_ra>
